<compile_context>
chip_gen: v7x
topology: tpu7x:2x2x1
jax: 0.10.0
libtpu: 0.0.40
codegen_flags: <defaults>
</compile_context>

<pallas_src>
import functools

import jax
import jax.numpy as jnp
from jax.experimental import pallas as pl
from jax.experimental.pallas import tpu as pltpu


# ----------------------------- Pallas kernel ------------------------------- #

def fcc_kernel(x1_ref, x2_ref, w1_ref, b1_ref, w2_ref, b2_ref,
               w3_ref, b3_ref, wh_ref, bh_ref, out_ref):
    # Shapes per grid step (bt = batch tile):
    #   x1_ref/x2_ref : (bt, 196) f32
    #   w1_ref (196,1024) bf16 = [w1a | w1b]        b1_ref (1,1024) f32
    #   w2_ref (512, 512) bf16 = [w2a | w2b]        b2_ref (1, 512) f32
    #   w3_ref (512,  64) bf16 = blkdiag(w3a,w3b)   b3_ref (1,  64) f32
    #   wh_ref ( 64, 128) f32  = [I_64 | wc_pad]    bh_ref (1, 128) f32 = [0|bc]
    #   out_ref (bt, 128) f32  = [f1 | f2 | y | zero-pad]

    def branch(x_bf16, w1, b1, w2, b2, w3):
        # Linear(196,512) + ReLU   (Dropout = identity at inference)
        h1 = jnp.maximum(
            jnp.dot(x_bf16, w1, preferred_element_type=jnp.float32) + b1, 0.0)
        # Linear(512,256) + BN(folded) + ReLU
        h2 = jnp.maximum(
            jnp.dot(h1.astype(jnp.bfloat16), w2,
                    preferred_element_type=jnp.float32) + b2, 0.0)
        # Linear(256,32) + BN(folded): pre-bias partial, already spread over the
        # 64-lane [f1|f2] slab by the block-diagonal W3 half.
        return jnp.dot(h2.astype(jnp.bfloat16), w3,
                       preferred_element_type=jnp.float32)

    # Branch a end-to-end, then branch b (fewer large f32 temps live at once).
    pa = branch(x1_ref[...].astype(jnp.bfloat16),
                w1_ref[:, :512], b1_ref[:, :512],
                w2_ref[:, :256], b2_ref[:, :256], w3_ref[:256, :])
    pb = branch(x2_ref[...].astype(jnp.bfloat16),
                w1_ref[:, 512:], b1_ref[:, 512:],
                w2_ref[:, 256:], b2_ref[:, 256:], w3_ref[256:, :])

    # Sum-of-dots replaces the old lane concat: directly the [f1|f2] slab.
    f12 = jnp.maximum(pa + pb + b3_ref[...], 0.0)            # (bt, 64) f32

    # Fused head + output concat: [I | WC] reproduces f1/f2 exactly (f12 >= 0,
    # ReLU idempotent, zero bias on those lanes) and computes
    # ReLU(f12 @ wc + bc) in the same small f32 MXU op.  Single unmasked
    # 128-lane store.
    out_ref[...] = jnp.maximum(
        jnp.dot(f12, wh_ref[...], preferred_element_type=jnp.float32)
        + bh_ref[...], 0.0)


# ------------------------------ JAX wrapper -------------------------------- #

def _round_up(n, m):
    return (n + m - 1) // m * m


def _pick_batch_tile():
    # v7x has 2 TensorCores/chip: cap the batch tile at 256 so the "parallel"
    # grid axis can shard steps across both cores at serving batch sizes.
    # Single-TC generations (v5e/v6e) get the largest tile (fewest steps).
    try:
        kind = jax.devices()[0].device_kind.lower()
    except Exception:
        kind = ""
    return 256 if ("v7" in kind or "7x" in kind) else 512


@functools.partial(jax.jit, static_argnames=("batch_tile",))
def fcc_forward(x1, x2, packed, batch_tile=None):
    """FCC forward (aux=False, share=False, eval). Returns (f1, f2, y)."""
    if batch_tile is None:
        batch_tile = _pick_batch_tile()

    B = x1.shape[0]
    x1f = x1.reshape(B, -1).astype(jnp.float32)              # (B, 196)
    x2f = x2.reshape(B, -1).astype(jnp.float32)              # (B, 196)
    K = x1f.shape[1]

    # Batch tiling: 16-row multiples (bf16 sublane tile), as few / as large
    # steps as possible; ragged batches are padded and sliced off afterwards.
    Bp16 = _round_up(B, 16)
    n_steps = pl.cdiv(Bp16, batch_tile)
    bt = _round_up(pl.cdiv(Bp16, n_steps), 16)
    Bp = _round_up(Bp16, bt)
    if Bp != B:
        x1f = jnp.pad(x1f, ((0, Bp - B), (0, 0)))
        x2f = jnp.pad(x2f, ((0, Bp - B), (0, 0)))

    W1, B1, W2, B2, W3, B3, WH, BH = packed
    weights = (W1, B1, W2, B2, W3, B3, WH, BH)
    grid = (Bp // bt,)

    def resident(a):
        # Constant index_map => block never changes => no re-DMA across steps.
        return pl.BlockSpec(a.shape, lambda i: (0,) * a.ndim)

    flops = Bp * (2 * (2 * K * 512 + 2 * 512 * 256 + 2 * 256 * 64)
                  + 2 * 64 * 128)
    bytes_accessed = (2 * Bp * K * 4
                      + sum(int(a.size) * a.dtype.itemsize for a in weights)
                      + Bp * 128 * 4)

    out = pl.pallas_call(
        fcc_kernel,
        grid=grid,
        in_specs=[pl.BlockSpec((bt, K), lambda i: (i, 0)),   # x1 batch tile
                  pl.BlockSpec((bt, K), lambda i: (i, 0))]   # x2 batch tile
                 + [resident(a) for a in weights],
        out_specs=pl.BlockSpec((bt, 128), lambda i: (i, 0)),
        out_shape=jax.ShapeDtypeStruct((Bp, 128), jnp.float32),
        compiler_params=pltpu.CompilerParams(
            dimension_semantics=("parallel",),
            vmem_limit_bytes=32 * 1024 * 1024),
        cost_estimate=pl.CostEstimate(flops=flops, transcendentals=0,
                                      bytes_accessed=bytes_accessed),
    )(x1f, x2f, *weights)

    f1 = out[:B, 0:32]
    f2 = out[:B, 32:64]
    y = out[:B, 64:66]
    return f1, f2, y


# --------------------------- parameter building ---------------------------- #

def _linear_init(key, fan_in, fan_out):
    # PyTorch nn.Linear default: U(-1/sqrt(fan_in), 1/sqrt(fan_in))
    kw, kb = jax.random.split(key)
    bound = 1.0 / jnp.sqrt(fan_in)
    w = jax.random.uniform(kw, (fan_in, fan_out), jnp.float32, -bound, bound)
    b = jax.random.uniform(kb, (fan_out,), jnp.float32, -bound, bound)
    return w, b.reshape(1, -1)


def _bn_init(key, n, eps=1e-5):
    kg, kb, km, kv = jax.random.split(key, 4)
    gamma = jax.random.uniform(kg, (n,), jnp.float32, 0.5, 1.5)
    beta = jax.random.normal(kb, (n,), jnp.float32) * 0.1
    mean = jax.random.normal(km, (n,), jnp.float32) * 0.1
    var = jax.random.uniform(kv, (n,), jnp.float32, 0.5, 1.5)
    scale = gamma / jnp.sqrt(var + eps)
    shift = beta - mean * scale
    return scale, shift


def _fold_bn(w, b, scale, shift):
    # BN(x @ w + b) = x @ (w*scale) + (b*scale + shift)   (inference only)
    return w * scale[None, :], b * scale[None, :] + shift[None, :]


def build_params(key):
    """Unpacked f32 params with BN folded; used by the plain-JAX reference."""
    keys = jax.random.split(key, 12)

    def branch_params(ks):
        w1, b1 = _linear_init(ks[0], 196, 512)               # Linear(196,512)+ReLU
        w2, b2 = _linear_init(ks[1], 512, 256)               # Linear(512,256)
        s2, t2 = _bn_init(ks[2], 256)                        # BatchNorm1d(256)
        w2, b2 = _fold_bn(w2, b2, s2, t2)
        w3, b3 = _linear_init(ks[3], 256, 32)                # Linear(256,32)
        s3, t3 = _bn_init(ks[4], 32)                         # BatchNorm1d(32)
        w3, b3 = _fold_bn(w3, b3, s3, t3)
        return w1, b1, w2, b2, w3, b3

    w1a, b1a, w2a, b2a, w3a, b3a = branch_params(keys[0:5])   # LeNet1
    w1b, b1b, w2b, b2b, w3b, b3b = branch_params(keys[5:10])  # LeNet1_v2

    wc, bc = _linear_init(keys[10], 64, 2)                    # LeNet2 Linear(64,2)
    sc, tc = _bn_init(keys[11], 2)                            # BatchNorm1d(2)
    wc, bc = _fold_bn(wc, bc, sc, tc)

    return (w1a, b1a, w2a, b2a, w3a, b3a,
            w1b, b1b, w2b, b2b, w3b, b3b,
            wc, bc)


def pack_params(params):
    """Packs the 14 f32 arrays into 10 kernel operands (bf16 weights)."""
    (w1a, b1a, w2a, b2a, w3a, b3a,
     w1b, b1b, w2b, b2b, w3b, b3b,
     wc, bc) = params

    W1 = jnp.concatenate([w1a, w1b], axis=1).astype(jnp.bfloat16)   # (196,1024)
    B1 = jnp.concatenate([b1a, b1b], axis=1)                        # (1,1024)

    W2 = jnp.concatenate([w2a, w2b], axis=1).astype(jnp.bfloat16)   # (512,512)
    B2 = jnp.concatenate([b2a, b2b], axis=1)                        # (1,512)

    # Block-diagonal layer 3: kernel does dot(h2a,W3[:256]) + dot(h2b,W3[256:]).
    z = jnp.zeros((256, 32), jnp.float32)
    W3 = jnp.concatenate(
        [jnp.concatenate([w3a, z], axis=1),
         jnp.concatenate([z, w3b], axis=1)], axis=0).astype(jnp.bfloat16)  # (512,64)
    B3 = jnp.concatenate([b3a, b3b], axis=1)                        # (1,64)

    # Fused head: [I_64 | wc_pad] kept in f32 so f1/f2 are never re-rounded.
    WH = jnp.concatenate(
        [jnp.eye(64, dtype=jnp.float32),
         jnp.pad(wc, ((0, 0), (0, 64 - wc.shape[1])))], axis=1)     # (64,128)
    BH = jnp.concatenate(
        [jnp.zeros((1, 64), jnp.float32),
         jnp.pad(bc, ((0, 0), (0, 64 - bc.shape[1])))], axis=1)     # (1,128)

    return (W1, B1, W2, B2, W3, B3, WH, BH)


# ------------------------------- reference --------------------------------- #

def fcc_reference(x1, x2, params):
    (w1a, b1a, w2a, b2a, w3a, b3a,
     w1b, b1b, w2b, b2b, w3b, b3b,
     wc, bc) = params
    B = x1.shape[0]
    x1f = x1.reshape(B, -1)
    x2f = x2.reshape(B, -1)

    def branch(x, w1, b1, w2, b2, w3, b3):
        h = jax.nn.relu(x @ w1 + b1)
        h = jax.nn.relu(h @ w2 + b2)
        h = jax.nn.relu(h @ w3 + b3)
        return h

    f1 = branch(x1f, w1a, b1a, w2a, b2a, w3a, b3a)
    f2 = branch(x2f, w1b, b1b, w2b, b2b, w3b, b3b)
    y = jax.nn.relu(jnp.concatenate([f1, f2], axis=1) @ wc + bc)
    return f1, f2, y


# --------------------------------- main ------------------------------------ #

if __name__ == "__main__":
    key = jax.random.PRNGKey(0)
    kx1, kx2, kp = jax.random.split(key, 3)

    B = 16
    # MNIST-halves style input implied by Linear(196, ...): (B, 1, 14, 14) NCHW.
    x1 = jax.random.normal(kx1, (B, 1, 14, 14), jnp.float32)
    x2 = jax.random.normal(kx2, (B, 1, 14, 14), jnp.float32)

    params = build_params(kp)
    packed = pack_params(params)

    f1, f2, y = fcc_forward(x1, x2, packed)
    jax.block_until_ready((f1, f2, y))

    rf1, rf2, ry = fcc_reference(x1, x2, params)

    assert f1.shape == (B, 32) and f2.shape == (B, 32) and y.shape == (B, 2)
    # bf16 MXU feeds vs. f32 reference -> loosened tolerances.
    assert jnp.allclose(f1, rf1, atol=5e-2, rtol=5e-2), float(jnp.max(jnp.abs(f1 - rf1)))
    assert jnp.allclose(f2, rf2, atol=5e-2, rtol=5e-2), float(jnp.max(jnp.abs(f2 - rf2)))
    assert jnp.allclose(y, ry, atol=5e-2, rtol=5e-2), float(jnp.max(jnp.abs(y - ry)))

    print("KERNEL_OK")
</pallas_src>

<mosaic_0001>
module attributes {stable_mosaic.version = 11 : i64} {
  func.func @fcc_kernel(%arg0: i32, %arg1: memref<16x196xf32, #tpu.memory_space<vmem>>, %arg2: memref<16x196xf32, #tpu.memory_space<vmem>>, %arg3: memref<196x1024xbf16, #tpu.memory_space<vmem>>, %arg4: memref<1x1024xf32, #tpu.memory_space<vmem>>, %arg5: memref<512x512xbf16, #tpu.memory_space<vmem>>, %arg6: memref<1x512xf32, #tpu.memory_space<vmem>>, %arg7: memref<512x64xbf16, #tpu.memory_space<vmem>>, %arg8: memref<1x64xf32, #tpu.memory_space<vmem>>, %arg9: memref<64x128xf32, #tpu.memory_space<vmem>>, %arg10: memref<1x128xf32, #tpu.memory_space<vmem>>, %arg11: memref<16x128xf32, #tpu.memory_space<vmem>>) attributes {dimension_semantics = [#tpu.dimension_semantics<parallel>], iteration_bounds = array<i64: 1>, scalar_prefetch = 0 : i64, scratch_operands = 0 : i64, tpu.core_type = #tpu.core_type<tc>, window_params = [{transform_indices = @transform_0, window_bounds = array<i64: 16, 196>}, {transform_indices = @transform_1, window_bounds = array<i64: 16, 196>}, {pipeline_mode = #tpu.pipeline_mode<synchronous>, transform_indices = @transform_2, window_bounds = array<i64: 196, 1024>}, {pipeline_mode = #tpu.pipeline_mode<synchronous>, transform_indices = @transform_3, window_bounds = array<i64: 1, 1024>}, {pipeline_mode = #tpu.pipeline_mode<synchronous>, transform_indices = @transform_4, window_bounds = array<i64: 512, 512>}, {pipeline_mode = #tpu.pipeline_mode<synchronous>, transform_indices = @transform_5, window_bounds = array<i64: 1, 512>}, {pipeline_mode = #tpu.pipeline_mode<synchronous>, transform_indices = @transform_6, window_bounds = array<i64: 512, 64>}, {pipeline_mode = #tpu.pipeline_mode<synchronous>, transform_indices = @transform_7, window_bounds = array<i64: 1, 64>}, {pipeline_mode = #tpu.pipeline_mode<synchronous>, transform_indices = @transform_8, window_bounds = array<i64: 64, 128>}, {pipeline_mode = #tpu.pipeline_mode<synchronous>, transform_indices = @transform_9, window_bounds = array<i64: 1, 128>}, {transform_indices = @transform_10, window_bounds = array<i64: 16, 128>}]} {
    %c0 = arith.constant 0 : index
    %c0_0 = arith.constant 0 : index
    %0 = vector.load %arg1[%c0, %c0_0] : memref<16x196xf32, #tpu.memory_space<vmem>>, vector<16x196xf32>
    %1 = arith.truncf %0 : vector<16x196xf32> to vector<16x196xbf16>
    %c0_1 = arith.constant 0 : index
    %c0_2 = arith.constant 0 : index
    %2 = vector.load %arg3[%c0_1, %c0_2] : memref<196x1024xbf16, #tpu.memory_space<vmem>>, vector<196x512xbf16>
    %c0_3 = arith.constant 0 : index
    %c0_4 = arith.constant 0 : index
    %3 = vector.load %arg4[%c0_3, %c0_4] : memref<1x1024xf32, #tpu.memory_space<vmem>>, vector<1x512xf32>
    %c0_5 = arith.constant 0 : index
    %c0_6 = arith.constant 0 : index
    %4 = vector.load %arg5[%c0_5, %c0_6] : memref<512x512xbf16, #tpu.memory_space<vmem>>, vector<512x256xbf16>
    %c0_7 = arith.constant 0 : index
    %c0_8 = arith.constant 0 : index
    %5 = vector.load %arg6[%c0_7, %c0_8] : memref<1x512xf32, #tpu.memory_space<vmem>>, vector<1x256xf32>
    %c0_9 = arith.constant 0 : index
    %c0_10 = arith.constant 0 : index
    %6 = vector.load %arg7[%c0_9, %c0_10] : memref<512x64xbf16, #tpu.memory_space<vmem>>, vector<256x64xbf16>
    %cst = arith.constant dense<0.000000e+00> : vector<16x512xf32>
    %7 = tpu.matmul %1, %2, %cst {dimension_numbers = #tpu.dot_dimension_numbers<[1], [0], [0], [1], [0, 0, 1, 1], [], []>} : vector<16x196xbf16>, vector<196x512xbf16>, vector<16x512xf32> -> vector<16x512xf32>
    %8 = vector.broadcast %3 : vector<1x512xf32> to vector<16x512xf32>
    %9 = arith.addf %7, %8 : vector<16x512xf32>
    %cst_11 = arith.constant 0.000000e+00 : f32
    %10 = vector.broadcast %cst_11 : f32 to vector<16x512xf32>
    %11 = arith.maximumf %9, %10 : vector<16x512xf32>
    %12 = arith.truncf %11 : vector<16x512xf32> to vector<16x512xbf16>
    %cst_12 = arith.constant dense<0.000000e+00> : vector<16x256xf32>
    %13 = tpu.matmul %12, %4, %cst_12 {dimension_numbers = #tpu.dot_dimension_numbers<[1], [0], [0], [1], [0, 0, 1, 1], [], []>} : vector<16x512xbf16>, vector<512x256xbf16>, vector<16x256xf32> -> vector<16x256xf32>
    %14 = vector.broadcast %5 : vector<1x256xf32> to vector<16x256xf32>
    %15 = arith.addf %13, %14 : vector<16x256xf32>
    %cst_13 = arith.constant 0.000000e+00 : f32
    %16 = vector.broadcast %cst_13 : f32 to vector<16x256xf32>
    %17 = arith.maximumf %15, %16 : vector<16x256xf32>
    %18 = arith.truncf %17 : vector<16x256xf32> to vector<16x256xbf16>
    %cst_14 = arith.constant dense<0.000000e+00> : vector<16x64xf32>
    %19 = tpu.matmul %18, %6, %cst_14 {dimension_numbers = #tpu.dot_dimension_numbers<[1], [0], [0], [1], [0, 0, 1, 1], [], []>} : vector<16x256xbf16>, vector<256x64xbf16>, vector<16x64xf32> -> vector<16x64xf32>
    %c0_15 = arith.constant 0 : index
    %c0_16 = arith.constant 0 : index
    %20 = vector.load %arg2[%c0_15, %c0_16] : memref<16x196xf32, #tpu.memory_space<vmem>>, vector<16x196xf32>
    %21 = arith.truncf %20 : vector<16x196xf32> to vector<16x196xbf16>
    %c0_17 = arith.constant 0 : index
    %c512 = arith.constant 512 : index
    %22 = vector.load %arg3[%c0_17, %c512] : memref<196x1024xbf16, #tpu.memory_space<vmem>>, vector<196x512xbf16>
    %c0_18 = arith.constant 0 : index
    %c512_19 = arith.constant 512 : index
    %23 = vector.load %arg4[%c0_18, %c512_19] : memref<1x1024xf32, #tpu.memory_space<vmem>>, vector<1x512xf32>
    %c0_20 = arith.constant 0 : index
    %c256 = arith.constant 256 : index
    %24 = vector.load %arg5[%c0_20, %c256] : memref<512x512xbf16, #tpu.memory_space<vmem>>, vector<512x256xbf16>
    %c0_21 = arith.constant 0 : index
    %c256_22 = arith.constant 256 : index
    %25 = vector.load %arg6[%c0_21, %c256_22] : memref<1x512xf32, #tpu.memory_space<vmem>>, vector<1x256xf32>
    %c256_23 = arith.constant 256 : index
    %c0_24 = arith.constant 0 : index
    %26 = vector.load %arg7[%c256_23, %c0_24] : memref<512x64xbf16, #tpu.memory_space<vmem>>, vector<256x64xbf16>
    %cst_25 = arith.constant dense<0.000000e+00> : vector<16x512xf32>
    %27 = tpu.matmul %21, %22, %cst_25 {dimension_numbers = #tpu.dot_dimension_numbers<[1], [0], [0], [1], [0, 0, 1, 1], [], []>} : vector<16x196xbf16>, vector<196x512xbf16>, vector<16x512xf32> -> vector<16x512xf32>
    %28 = vector.broadcast %23 : vector<1x512xf32> to vector<16x512xf32>
    %29 = arith.addf %27, %28 : vector<16x512xf32>
    %cst_26 = arith.constant 0.000000e+00 : f32
    %30 = vector.broadcast %cst_26 : f32 to vector<16x512xf32>
    %31 = arith.maximumf %29, %30 : vector<16x512xf32>
    %32 = arith.truncf %31 : vector<16x512xf32> to vector<16x512xbf16>
    %cst_27 = arith.constant dense<0.000000e+00> : vector<16x256xf32>
    %33 = tpu.matmul %32, %24, %cst_27 {dimension_numbers = #tpu.dot_dimension_numbers<[1], [0], [0], [1], [0, 0, 1, 1], [], []>} : vector<16x512xbf16>, vector<512x256xbf16>, vector<16x256xf32> -> vector<16x256xf32>
    %34 = vector.broadcast %25 : vector<1x256xf32> to vector<16x256xf32>
    %35 = arith.addf %33, %34 : vector<16x256xf32>
    %cst_28 = arith.constant 0.000000e+00 : f32
    %36 = vector.broadcast %cst_28 : f32 to vector<16x256xf32>
    %37 = arith.maximumf %35, %36 : vector<16x256xf32>
    %38 = arith.truncf %37 : vector<16x256xf32> to vector<16x256xbf16>
    %cst_29 = arith.constant dense<0.000000e+00> : vector<16x64xf32>
    %39 = tpu.matmul %38, %26, %cst_29 {dimension_numbers = #tpu.dot_dimension_numbers<[1], [0], [0], [1], [0, 0, 1, 1], [], []>} : vector<16x256xbf16>, vector<256x64xbf16>, vector<16x64xf32> -> vector<16x64xf32>
    %40 = arith.addf %19, %39 : vector<16x64xf32>
    %c0_30 = arith.constant 0 : index
    %c0_31 = arith.constant 0 : index
    %41 = vector.load %arg8[%c0_30, %c0_31] : memref<1x64xf32, #tpu.memory_space<vmem>>, vector<1x64xf32>
    %42 = vector.broadcast %41 : vector<1x64xf32> to vector<16x64xf32>
    %43 = arith.addf %40, %42 : vector<16x64xf32>
    %cst_32 = arith.constant 0.000000e+00 : f32
    %44 = vector.broadcast %cst_32 : f32 to vector<16x64xf32>
    %45 = arith.maximumf %43, %44 : vector<16x64xf32>
    %c0_33 = arith.constant 0 : index
    %c0_34 = arith.constant 0 : index
    %46 = vector.load %arg9[%c0_33, %c0_34] : memref<64x128xf32, #tpu.memory_space<vmem>>, vector<64x128xf32>
    %cst_35 = arith.constant dense<0.000000e+00> : vector<16x128xf32>
    %47 = tpu.matmul %45, %46, %cst_35 {dimension_numbers = #tpu.dot_dimension_numbers<[1], [0], [0], [1], [0, 0, 1, 1], [], []>} : vector<16x64xf32>, vector<64x128xf32>, vector<16x128xf32> -> vector<16x128xf32>
    %c0_36 = arith.constant 0 : index
    %c0_37 = arith.constant 0 : index
    %48 = vector.load %arg10[%c0_36, %c0_37] : memref<1x128xf32, #tpu.memory_space<vmem>>, vector<1x128xf32>
    %49 = vector.broadcast %48 : vector<1x128xf32> to vector<16x128xf32>
    %50 = arith.addf %47, %49 : vector<16x128xf32>
    %cst_38 = arith.constant 0.000000e+00 : f32
    %51 = vector.broadcast %cst_38 : f32 to vector<16x128xf32>
    %52 = arith.maximumf %50, %51 : vector<16x128xf32>
    %c0_39 = arith.constant 0 : index
    %c0_40 = arith.constant 0 : index
    %53 = vector.load %arg11[%c0_39, %c0_40] : memref<16x128xf32, #tpu.memory_space<vmem>>, vector<16x128xf32>
    tpu.vector_store %arg11[%c0_39, %c0_40], %52 {strides = array<i32>} : memref<16x128xf32, #tpu.memory_space<vmem>>, vector<16x128xf32>,
    return
  }
  func.func @transform_0(%arg0: i32) -> (i32, i32) {
    %c0_i32 = arith.constant 0 : i32
    %c0_i32_0 = arith.constant 0 : i32
    return %arg0, %c0_i32 : i32, i32
  }
  func.func @transform_1(%arg0: i32) -> (i32, i32) {
    %c0_i32 = arith.constant 0 : i32
    %c0_i32_0 = arith.constant 0 : i32
    return %arg0, %c0_i32 : i32, i32
  }
  func.func @transform_2(%arg0: i32) -> (i32, i32) {
    %c0_i32 = arith.constant 0 : i32
    %c0_i32_0 = arith.constant 0 : i32
    %c0_i32_1 = arith.constant 0 : i32
    return %c0_i32, %c0_i32_0 : i32, i32
  }
  func.func @transform_3(%arg0: i32) -> (i32, i32) {
    %c0_i32 = arith.constant 0 : i32
    %c0_i32_0 = arith.constant 0 : i32
    %c0_i32_1 = arith.constant 0 : i32
    return %c0_i32, %c0_i32_0 : i32, i32
  }
  func.func @transform_4(%arg0: i32) -> (i32, i32) {
    %c0_i32 = arith.constant 0 : i32
    %c0_i32_0 = arith.constant 0 : i32
    %c0_i32_1 = arith.constant 0 : i32
    return %c0_i32, %c0_i32_0 : i32, i32
  }
  func.func @transform_5(%arg0: i32) -> (i32, i32) {
    %c0_i32 = arith.constant 0 : i32
    %c0_i32_0 = arith.constant 0 : i32
    %c0_i32_1 = arith.constant 0 : i32
    return %c0_i32, %c0_i32_0 : i32, i32
  }
  func.func @transform_6(%arg0: i32) -> (i32, i32) {
    %c0_i32 = arith.constant 0 : i32
    %c0_i32_0 = arith.constant 0 : i32
    %c0_i32_1 = arith.constant 0 : i32
    return %c0_i32, %c0_i32_0 : i32, i32
  }
  func.func @transform_7(%arg0: i32) -> (i32, i32) {
    %c0_i32 = arith.constant 0 : i32
    %c0_i32_0 = arith.constant 0 : i32
    %c0_i32_1 = arith.constant 0 : i32
    return %c0_i32, %c0_i32_0 : i32, i32
  }
  func.func @transform_8(%arg0: i32) -> (i32, i32) {
    %c0_i32 = arith.constant 0 : i32
    %c0_i32_0 = arith.constant 0 : i32
    %c0_i32_1 = arith.constant 0 : i32
    return %c0_i32, %c0_i32_0 : i32, i32
  }
  func.func @transform_9(%arg0: i32) -> (i32, i32) {
    %c0_i32 = arith.constant 0 : i32
    %c0_i32_0 = arith.constant 0 : i32
    %c0_i32_1 = arith.constant 0 : i32
    return %c0_i32, %c0_i32_0 : i32, i32
  }
  func.func @transform_10(%arg0: i32) -> (i32, i32) {
    %c0_i32 = arith.constant 0 : i32
    %c0_i32_0 = arith.constant 0 : i32
    return %arg0, %c0_i32 : i32, i32
  }
}

</mosaic_0001>

<bundles_post_ra>
// kernel: fcc_forward.1
= control target key start
LH: loop header
LB: loop body
LE: loop exit
PB: predicated region body
PF: predicated region fallthrough
CT: control target
= control target key end

     0   :  { %vm461_vm0 = vcmask 556032   ;;  %vm465_vm1 = vcmask 1041408   ;;  %vm2260_vm2 = vcmask 523264   ;;  %s3925_s2 = inlined_call_operand.vmem [shape: bf16[196,1024], index: 2, kind: input, shape index: {}]   ;;  %s3926_s0 = inlined_call_operand.vmem [shape: f32[16,196], index: 0, kind: input, shape index: {}]   ;;  %s3927_s4 = inlined_call_operand.vmem [shape: bf16[512,512], index: 4, kind: input, shape index: {}]   ;;  %s3928_s1 = inlined_call_operand.vmem [shape: f32[16,196], index: 1, kind: input, shape index: {}]   ;;  %s3929_s3 = inlined_call_operand.vmem [shape: f32[1,1024], index: 3, kind: input, shape index: {}]   ;;  %s3930_s6 = inlined_call_operand.vmem [shape: bf16[512,64], index: 6, kind: input, shape index: {}]   ;;  %s3931_s5 = inlined_call_operand.vmem [shape: f32[1,512], index: 5, kind: input, shape index: {}]   ;;  %s3932_s8 = inlined_call_operand.vmem [shape: f32[64,128], index: 8, kind: input, shape index: {}]   ;;  %s3933_s7 = inlined_call_operand.vmem [shape: f32[1,64], index: 7, kind: input, shape index: {}]   ;;  %s3934_s9 = inlined_call_operand.vmem [shape: f32[1,128], index: 9, kind: input, shape index: {}]   ;;  %s3935_s10 = inlined_call_operand.vmem [shape: f32[16,128], index: 10, kind: output, shape index: {}]  }
   0x1   :  { %v42_v0 = vld [vmem:[%s3925_s2] sm:$0xff]  ;;  %v43_v2 = vld [vmem:[%s3925_s2 + $0x8] sm:$0xff]  ;;  %v39_v46 = vld [vmem:[%s3926_s0 + $0x18] sm:$0xff] }
   0x2   :  { %v44_v1 = vld [vmem:[%s3925_s2 + $0x20] sm:$0xff]  ;;  %v45_v4 = vld [vmem:[%s3925_s2 + $0x28] sm:$0xff] }
   0x3   :  { %v2351_v3 = vcombine.high %v42_v0, %v44_v1  ;;  %v2350_v5 = vcombine.low %v42_v0, %v44_v1  ;;  %v46_v6 = vld [vmem:[%s3925_s2 + $0x40] sm:$0xff]  ;;  %v2353_v8 = vcombine.high %v43_v2, %v45_v4  ;;  %v2352_v9 = vcombine.low %v43_v2, %v45_v4  ;;  %v47_v11 = vld [vmem:[%s3925_s2 + $0x48] sm:$0xff] }
   0x4   :  { %v48_v7 = vld [vmem:[%s3925_s2 + $0x60] sm:$0xff]  ;;  %v49_v12 = vld [vmem:[%s3925_s2 + $0x68] sm:$0xff] }
   0x5   :  { %v2355_v10 = vcombine.high %v46_v6, %v48_v7  ;;  %v50_v13 = vld [vmem:[%s3925_s2 + $0x80] sm:$0xff]  ;;  %478 = vmatprep.subr.bf16.mxu0 %v2351_v3  ;;  %v2357_v14 = vcombine.high %v47_v11, %v49_v12  ;;  %v51_v16 = vld [vmem:[%s3925_s2 + $0x88] sm:$0xff]  ;;  %521 = vmatprep.subr.bf16.mxu1 %v2353_v8  ;;  %v2354_v18 = vcombine.low %v46_v6, %v48_v7 }
   0x6   :  { %v52_v15 = vld [vmem:[%s3925_s2 + $0xa0] sm:$0xff]  ;;  %v53_v17 = vld [vmem:[%s3925_s2 + $0xa8] sm:$0xff]  ;;  %479 = vmatpush1.bf16.msra.mxu0 %v2350_v5  ;;  %522 = vmatpush1.bf16.msra.mxu1 %v2352_v9  ;;  %v2356_v19 = vcombine.low %v47_v11, %v49_v12 }
   0x7   :  { %480 = vmatprep.subr.bf16.mxu0 %v2355_v10  ;;  %v2359_v20 = vcombine.high %v50_v13, %v52_v15  ;;  %523 = vmatprep.subr.bf16.mxu1 %v2357_v14  ;;  %v2361_v21 = vcombine.high %v51_v16, %v53_v17  ;;  %v54_v22 = vld [vmem:[%s3925_s2 + $0xc0] sm:$0xff]  ;;  %v55_v24 = vld [vmem:[%s3925_s2 + $0xc8] sm:$0xff]  ;;  %v2358_v26 = vcombine.low %v50_v13, %v52_v15 }
   0x8   :  { %v56_v23 = vld [vmem:[%s3925_s2 + $0xe0] sm:$0xff]  ;;  %v57_v25 = vld [vmem:[%s3925_s2 + $0xe8] sm:$0xff]  ;;  %v2360_v27 = vcombine.low %v51_v16, %v53_v17 }
   0x9   :  { %v2363_v28 = vcombine.high %v54_v22, %v56_v23  ;;  %v2365_v29 = vcombine.high %v55_v24, %v57_v25  ;;  %v58_v30 = vld [vmem:[%s3925_s2 + $0x100] sm:$0xff]  ;;  %v59_v32 = vld [vmem:[%s3925_s2 + $0x108] sm:$0xff]  ;;  %v2362_v34 = vcombine.low %v54_v22, %v56_v23  ;;  %v2364_v35 = vcombine.low %v55_v24, %v57_v25 }
   0xa   :  { %481 = vmatpush1.bf16.msra.mxu0 %v2354_v18  ;;  %524 = vmatpush1.bf16.msra.mxu1 %v2356_v19  ;;  %v60_v31 = vld [vmem:[%s3925_s2 + $0x120] sm:$0xff]  ;;  %v61_v33 = vld [vmem:[%s3925_s2 + $0x128] sm:$0xff] }
   0xb   :  { %482 = vmatprep.subr.bf16.mxu0 %v2359_v20  ;;  %525 = vmatprep.subr.bf16.mxu1 %v2361_v21  ;;  %v2367_v36 = vcombine.high %v58_v30, %v60_v31  ;;  %v2369_v37 = vcombine.high %v59_v32, %v61_v33  ;;  %v62_v38 = vld [vmem:[%s3925_s2 + $0x140] sm:$0xff]  ;;  %v63_v40 = vld [vmem:[%s3925_s2 + $0x148] sm:$0xff]  ;;  %v2366_v42 = vcombine.low %v58_v30, %v60_v31 }
   0xc   :  { %v64_v39 = vld [vmem:[%s3925_s2 + $0x160] sm:$0xff]  ;;  %v65_v41 = vld [vmem:[%s3925_s2 + $0x168] sm:$0xff]  ;;  %v2368_v44 = vcombine.low %v59_v32, %v61_v33 }
   0xd   :  { %v37_v43 = vld [vmem:[%s3926_s0 + $0x8] sm:$0xff]  ;;  %v2371_v45 = vcombine.high %v62_v38, %v64_v39  ;;  %v2373_v47 = vcombine.high %v63_v40, %v65_v41  ;;  %v66_v48 = vld [vmem:[%s3925_s2 + $0x180] sm:$0xff]  ;;  %v2370_v53 = vcombine.low %v62_v38, %v64_v39  ;;  %v2372_v54 = vcombine.low %v63_v40, %v65_v41 }
   0xe   :  { %483 = vmatpush1.bf16.msra.mxu0 %v2358_v26  ;;  %526 = vmatpush1.bf16.msra.mxu1 %v2360_v27  ;;  %v68_v49 = vld [vmem:[%s3925_s2 + $0x1a0] sm:$0xff]  ;;  %v41_v50 = vpack.c.bf16 %v39_v46, %v37_v43  ;;  %v67_v51 = vld [vmem:[%s3925_s2 + $0x188] sm:$0xff]  ;;  %v1007_v43 = vld [vmem:[%s3925_s2 + $0x30] sm:$0xff] }
   0xf   :  { %484 = vmatprep.subr.bf16.mxu0 %v2363_v28  ;;  %527 = vmatprep.subr.bf16.mxu1 %v2365_v29  ;;  %v69_v52 = vld [vmem:[%s3925_s2 + $0x1a8] sm:$0xff]  ;;  %v2375_v55 = vcombine.high %v66_v48, %v68_v49  ;;  %v70_v57 = vld [vmem:[%s3925_s2 + $0x1c0] sm:$0xff]  ;;  %v2374_v61 = vcombine.low %v66_v48, %v68_v49 }
  0x10   :  { %2403 = vmatprep.mubr.msk.bf16.mxu0 %vm461_vm0, %v41_v50  ;;  %v2377_v56 = vcombine.high %v67_v51, %v69_v52  ;;  %v72_v58 = vld [vmem:[%s3925_s2 + $0x1e0] sm:$0xff]  ;;  %2405 = vmatprep.mubr.msk.bf16.mxu1 %vm461_vm0, %v41_v50  ;;  %v71_v59 = vld [vmem:[%s3925_s2 + $0x1c8] sm:$0xff]  ;;  %v2376_v62 = vcombine.low %v67_v51, %v69_v52  ;;  %v1002_v50 = vld [vmem:[%s3928_s1 + $0x18] sm:$0xff] }
  0x11   :  { %v73_v60 = vld [vmem:[%s3925_s2 + $0x1e8] sm:$0xff]  ;;  %v2379_v63 = vcombine.high %v70_v57, %v72_v58  ;;  %v74_v1 = vld [vmem:[%s3925_s2 + $0x200] sm:$0xff]  ;;  %v2378_v5 = vcombine.low %v70_v57, %v72_v58  ;;  %v1009_v52 = vld [vmem:[%s3925_s2 + $0x50] sm:$0xff] }
  0x12   :  { %485 = vmatpush1.bf16.msra.mxu0 %v2362_v34  ;;  %528 = vmatpush1.bf16.msra.mxu1 %v2364_v35  ;;  %v2381_v0 = vcombine.high %v71_v59, %v73_v60  ;;  %v76_v2 = vld [vmem:[%s3925_s2 + $0x220] sm:$0xff]  ;;  %v75_v3 = vld [vmem:[%s3925_s2 + $0x208] sm:$0xff]  ;;  %v2380_v6 = vcombine.low %v71_v59, %v73_v60  ;;  %v1013_v58 = vld [vmem:[%s3925_s2 + $0x90] sm:$0xff] }
  0x13   :  { %486 = vmatprep.subr.bf16.mxu0 %v2367_v36  ;;  %529 = vmatprep.subr.bf16.mxu1 %v2369_v37  ;;  %v77_v4 = vld [vmem:[%s3925_s2 + $0x228] sm:$0xff]  ;;  %v2383_v7 = vcombine.high %v74_v1, %v76_v2  ;;  %v78_v9 = vld [vmem:[%s3925_s2 + $0x240] sm:$0xff]  ;;  %v2382_v13 = vcombine.low %v74_v1, %v76_v2  ;;  %v1015_v60 = vld [vmem:[%s3925_s2 + $0xb0] sm:$0xff] }
  0x14   :  { %v2385_v8 = vcombine.high %v75_v3, %v77_v4  ;;  %v80_v10 = vld [vmem:[%s3925_s2 + $0x260] sm:$0xff]  ;;  %v79_v11 = vld [vmem:[%s3925_s2 + $0x248] sm:$0xff]  ;;  %v2384_v14 = vcombine.low %v75_v3, %v77_v4  ;;  %v1019_v1 = vld [vmem:[%s3925_s2 + $0xf0] sm:$0xff]  ;;  %v2479_v2 = vcombine.high %v1013_v58, %v1015_v60 }
  0x15   :  { %v81_v12 = vld [vmem:[%s3925_s2 + $0x268] sm:$0xff]  ;;  %v2387_v15 = vcombine.high %v78_v9, %v80_v10  ;;  %v82_v17 = vld [vmem:[%s3925_s2 + $0x280] sm:$0xff]  ;;  %v2386_v21 = vcombine.low %v78_v9, %v80_v10 }
  0x16   :  { %487 = vmatpush1.bf16.msra.mxu0 %v2366_v42  ;;  %530 = vmatpush1.bf16.msra.mxu1 %v2368_v44  ;;  %v2389_v16 = vcombine.high %v79_v11, %v81_v12  ;;  %v84_v18 = vld [vmem:[%s3925_s2 + $0x2a0] sm:$0xff]  ;;  %v83_v19 = vld [vmem:[%s3925_s2 + $0x288] sm:$0xff]  ;;  %v2388_v22 = vcombine.low %v79_v11, %v81_v12  ;;  %v1005_v42 = vld [vmem:[%s3925_s2 + $0x10] sm:$0xff] }
  0x17   :  { %488 = vmatprep.subr.bf16.mxu0 %v2371_v45  ;;  %531 = vmatprep.subr.bf16.mxu1 %v2373_v47  ;;  %v85_v20 = vld [vmem:[%s3925_s2 + $0x2a8] sm:$0xff]  ;;  %v2391_v23 = vcombine.high %v82_v17, %v84_v18  ;;  %v86_v25 = vld [vmem:[%s3925_s2 + $0x2c0] sm:$0xff]  ;;  %v2390_v29 = vcombine.low %v82_v17, %v84_v18  ;;  %v38_v44 = vld [vmem:[%s3926_s0 + $0x10] sm:$0xff]  ;;  %v2471_v48 = vcombine.high %v1005_v42, %v1007_v43 }
  0x18   :  { %v2393_v24 = vcombine.high %v83_v19, %v85_v20  ;;  %v88_v26 = vld [vmem:[%s3925_s2 + $0x2e0] sm:$0xff]  ;;  %v87_v27 = vld [vmem:[%s3925_s2 + $0x2c8] sm:$0xff]  ;;  %v2392_v30 = vcombine.low %v83_v19, %v85_v20  ;;  %v1025_v12 = vld [vmem:[%s3925_s2 + $0x150] sm:$0xff] }
  0x19   :  { %v89_v28 = vld [vmem:[%s3925_s2 + $0x2e8] sm:$0xff]  ;;  %v2395_v31 = vcombine.high %v86_v25, %v88_v26  ;;  %v90_v33 = vld [vmem:[%s3925_s2 + $0x300] sm:$0x33]  ;;  %v2394_v35 = vcombine.low %v86_v25, %v88_v26  ;;  %v1029_v18 = vld [vmem:[%s3925_s2 + $0x190] sm:$0xff] }
  0x1a   :  { %489 = vmatpush1.bf16.msra.mxu0 %v2370_v53  ;;  %532 = vmatpush1.bf16.msra.mxu1 %v2372_v54  ;;  %v2397_v32 = vcombine.high %v87_v27, %v89_v28  ;;  %v91_v34 = vld [vmem:[%s3925_s2 + $0x308] sm:$0x33]  ;;  %v2396_v36 = vcombine.low %v87_v27, %v89_v28  ;;  %v2399_v37 = vcombine.high %v90_v33, %v90_v33  ;;  %v36_v41 = vld [vmem:[%s3926_s0] sm:$0xff]  ;;  %v1011_v53 = vld [vmem:[%s3925_s2 + $0x70] sm:$0xff] }
  0x1b   :  { %490 = vmatprep.subr.bf16.mxu0 %v2375_v55  ;;  %533 = vmatprep.subr.bf16.mxu1 %v2377_v56  ;;  %v2398_v38 = vcombine.low %v90_v33, %v90_v33  ;;  %v2401_v39 = vcombine.high %v91_v34, %v91_v34  ;;  %v2400_v40 = vcombine.low %v91_v34, %v91_v34  ;;  %v2741_v46 = vld [vmem:[%s3927_s4 + $0x4] ss:$16 sps:$4 sm:$0xff]   ;;  %v1000_v49 = vld [vmem:[%s3928_s1 + $0x8] sm:$0xff]  ;;  %v2739_v54 = vld [vmem:[%s3927_s4] ss:$16 sps:$4 sm:$0xff]  }
  0x1c   :  { %v40_v51 = vpack.c.bf16 %v38_v44, %v36_v41  ;;  %v2470_v55 = vcombine.low %v1005_v42, %v1007_v43  ;;  %v3210_v56 = vpack.c.bf16 %v1002_v50, %v1000_v49  ;;  %v2475_v57 = vcombine.high %v1009_v52, %v1011_v53  ;;  %v2744_v59 = vld [vmem:[%s3927_s4 + $0x24] ss:$16 sps:$4 sm:$0xff]   ;;  %v2745_v3 = vld [vmem:[%s3927_s4 + $0x40] ss:$16 sps:$4 sm:$0xff]  }
  0x1d   :  { %v467_v45 = vsel %vm465_vm1, %v2398_v38, 0  ;;  %v473_v47 = vsel %vm465_vm1, %v2400_v40, 0  ;;  %v2750_v4 = vld [vmem:[%s3927_s4 + $0x64] ss:$16 sps:$4 sm:$0xff]   ;;  %v2748_v9 = vld [vmem:[%s3927_s4 + $0x60] ss:$16 sps:$4 sm:$0xff]  }
  0x1e   :  { %491 = vmatpush1.bf16.msra.mxu0 %v2374_v61  ;;  %534 = vmatpush1.bf16.msra.mxu1 %v2376_v62  ;;  %v2742_v61 = vld [vmem:[%s3927_s4 + $0x20] ss:$16 sps:$4 sm:$0xff]   ;;  %v2747_v62 = vld [vmem:[%s3927_s4 + $0x44] ss:$16 sps:$4 sm:$0xff]  }
  0x1f   :  { %492 = vmatprep.subr.bf16.mxu0 %v2379_v63  ;;  %535 = vmatprep.subr.bf16.mxu1 %v2381_v0  ;;  %v2474_v63 = vcombine.low %v1009_v52, %v1011_v53  ;;  %v1017_v0 = vld [vmem:[%s3925_s2 + $0xd0] sm:$0xff] }
  0x20   :  { %v2753_v10 = vld [vmem:[%s3927_s4 + $0x84] ss:$16 sps:$4 sm:$0xff]   ;;  %v2482_v11 = vcombine.low %v1017_v0, %v1019_v1  ;;  %v2757_v27 = vld [vmem:[%s3927_s4 + $0xc0] ss:$16 sps:$4 sm:$0xff]  }
  0x21   :  { %v1031_v19 = vld [vmem:[%s3925_s2 + $0x1b0] sm:$0xff] }
  0x22   :  { %493 = vmatpush1.bf16.msra.mxu0 %v2378_v5  ;;  %536 = vmatpush1.bf16.msra.mxu1 %v2380_v6  ;;  %v2478_v5 = vcombine.low %v1013_v58, %v1015_v60  ;;  %v1021_v6 = vld [vmem:[%s3925_s2 + $0x110] sm:$0xff]  ;;  %v2495_v26 = vcombine.high %v1029_v18, %v1031_v19 }
  0x23   :  { %494 = vmatprep.subr.bf16.mxu0 %v2383_v7  ;;  %537 = vmatprep.subr.bf16.mxu1 %v2385_v8  ;;  %v1023_v7 = vld [vmem:[%s3925_s2 + $0x130] sm:$0xff]  ;;  %v2483_v8 = vcombine.high %v1017_v0, %v1019_v1  ;;  %v999_v1 = vld [vmem:[%s3928_s1] sm:$0xff] }
  0x24   :  { %v2486_v17 = vcombine.low %v1021_v6, %v1023_v7  ;;  %v1035_v25 = vld [vmem:[%s3925_s2 + $0x1f0] sm:$0xff] }
  0x25   :  { %v2762_v28 = vld [vmem:[%s3927_s4 + $0xe4] ss:$16 sps:$4 sm:$0xff]   ;;  %v2760_v33 = vld [vmem:[%s3927_s4 + $0xe0] ss:$16 sps:$4 sm:$0xff]  }
  0x26   :  { %495 = vmatpush1.bf16.msra.mxu0 %v2382_v13  ;;  %538 = vmatpush1.bf16.msra.mxu1 %v2384_v14  ;;  %v1027_v13 = vld [vmem:[%s3925_s2 + $0x170] sm:$0xff]  ;;  %v2487_v14 = vcombine.high %v1021_v6, %v1023_v7  ;;  %v1010_v6 = vld [vmem:[%s3925_s2 + $0x58] sm:$0xff] }
  0x27   :  { %496 = vmatprep.subr.bf16.mxu0 %v2387_v15  ;;  %539 = vmatprep.subr.bf16.mxu1 %v2389_v16  ;;  %v2751_v15 = vld [vmem:[%s3927_s4 + $0x80] ss:$16 sps:$4 sm:$0xff]   ;;  %v2756_v16 = vld [vmem:[%s3927_s4 + $0xa4] ss:$16 sps:$4 sm:$0xff]   ;;  %v2491_v20 = vcombine.high %v1025_v12, %v1027_v13  ;;  %v1012_v7 = vld [vmem:[%s3925_s2 + $0x78] sm:$0xff] }
  0x28   :  { %v2765_v34 = vld [vmem:[%s3927_s4 + $0x104] ss:$16 sps:$4 sm:$0xff]   ;;  %v2775_v0 = vld [vmem:[%s3927_s4 + $0x180] ss:$16 sps:$4 sm:$0xff]  }
  0x29   :  { %v2768_v40 = vld [vmem:[%s3927_s4 + $0x124] ss:$16 sps:$4 sm:$0xff]  }
  0x2a   :  { %497 = vmatpush1.bf16.msra.mxu0 %v2386_v21  ;;  %540 = vmatpush1.bf16.msra.mxu1 %v2388_v22  ;;  %v2754_v21 = vld [vmem:[%s3927_s4 + $0xa0] ss:$16 sps:$4 sm:$0xff]   ;;  %v2759_v22 = vld [vmem:[%s3927_s4 + $0xc4] ss:$16 sps:$4 sm:$0xff]  }
  0x2b   :  { %498 = vmatprep.subr.bf16.mxu0 %v2391_v23  ;;  %541 = vmatprep.subr.bf16.mxu1 %v2393_v24  ;;  %v2490_v23 = vcombine.low %v1025_v12, %v1027_v13  ;;  %v1033_v24 = vld [vmem:[%s3925_s2 + $0x1d0] sm:$0xff]  ;;  %v1014_v12 = vld [vmem:[%s3925_s2 + $0x98] sm:$0xff] }
  0x2c   :  { %v1045_v42 = vld [vmem:[%s3925_s2 + $0x290] sm:$0xff]  ;;  %v1016_v13 = vld [vmem:[%s3925_s2 + $0xb8] sm:$0xff] }
  0x2d   :  { %v1047_v43 = vld [vmem:[%s3925_s2 + $0x2b0] sm:$0xff] }
  0x2e   :  { %499 = vmatpush1.bf16.msra.mxu0 %v2390_v29  ;;  %542 = vmatpush1.bf16.msra.mxu1 %v2392_v30  ;;  %v2494_v29 = vcombine.low %v1029_v18, %v1031_v19  ;;  %v1037_v30 = vld [vmem:[%s3925_s2 + $0x210] sm:$0xff]  ;;  %v2510_v52 = vcombine.low %v1045_v42, %v1047_v43  ;;  %v2480_v18 = vcombine.low %v1014_v12, %v1016_v13 }
  0x2f   :  { %500 = vmatprep.subr.bf16.mxu0 %v2395_v31  ;;  %543 = vmatprep.subr.bf16.mxu1 %v2397_v32  ;;  %v1039_v31 = vld [vmem:[%s3925_s2 + $0x230] sm:$0xff]  ;;  %v2499_v32 = vcombine.high %v1033_v24, %v1035_v25 }
  0x30   :  { %v2503_v38 = vcombine.high %v1037_v30, %v1039_v31  ;;  %v2502_v41 = vcombine.low %v1037_v30, %v1039_v31  ;;  %v1049_v49 = vld [vmem:[%s3925_s2 + $0x2d0] sm:$0xff]  ;;  %v1034_v31 = vld [vmem:[%s3925_s2 + $0x1d8] sm:$0xff] }
  0x31   :  { %v1051_v50 = vld [vmem:[%s3925_s2 + $0x2f0] sm:$0xff] }
  0x32   :  { %501 = vmatpush1.bf16.msra.mxu0 %v2394_v35  ;;  %544 = vmatpush1.bf16.msra.mxu1 %v2396_v36  ;;  %v2498_v35 = vcombine.low %v1033_v24, %v1035_v25  ;;  %v1041_v36 = vld [vmem:[%s3925_s2 + $0x250] sm:$0xff]  ;;  %v2514_v58 = vcombine.low %v1049_v49, %v1051_v50  ;;  %v1028_v24 = vld [vmem:[%s3925_s2 + $0x178] sm:$0xff] }
  0x33   :  { %2402 = vmatprep.subr.msk.bf16.mxu0 %vm465_vm1, %v2399_v37  ;;  %2404 = vmatprep.subr.msk.bf16.mxu1 %vm465_vm1, %v2401_v39  ;;  %v1043_v37 = vld [vmem:[%s3925_s2 + $0x270] sm:$0xff] }
  0x34   :  { %v2763_v39 = vld [vmem:[%s3927_s4 + $0x100] ss:$16 sps:$4 sm:$0xff]   ;;  %v2507_v44 = vcombine.high %v1041_v36, %v1043_v37  ;;  %v2774_v53 = vld [vmem:[%s3927_s4 + $0x164] ss:$16 sps:$4 sm:$0xff]  }
  0x36   :  { %503 = vmatpush1.bf16.msra.mxu0 %v467_v45  ;;  %546 = vmatpush1.bf16.msra.mxu1 %v473_v47  ;;  %v2766_v45 = vld [vmem:[%s3927_s4 + $0x120] ss:$16 sps:$4 sm:$0xff]   ;;  %v2771_v47 = vld [vmem:[%s3927_s4 + $0x144] ss:$16 sps:$4 sm:$0xff]  }
  0x37   :  { %907 = vmatprep.subr.bf16.mxu0 %v2741_v46  ;;  %1439 = vmatprep.subr.bf16.mxu1 %v2471_v48  ;;  %v2506_v46 = vcombine.low %v1041_v36, %v1043_v37  ;;  %v2511_v48 = vcombine.high %v1045_v42, %v1047_v43  ;;  %v1040_v36 = vld [vmem:[%s3925_s2 + $0x238] sm:$0xff] }
  0x38   :  { %v1046_v43 = vld [vmem:[%s3925_s2 + $0x298] sm:$0xff] }
  0x39   :  { %511 = vmatmul.mubr.bf16.vlgmr.msra.gmra.mrb[0].mxu0 %v40_v51  ;;  %554 = vmatmul.mubr.bf16.vlgmr.msra.gmra.mrb[0].mxu1 %v40_v51  ;;  %v2769_v51 = vld [vmem:[%s3927_s4 + $0x140] ss:$16 sps:$4 sm:$0xff]  }
  0x3a   :  { %908 = vmatpush1.bf16.msra.mxu0 %v2739_v54  ;;  %1440 = vmatpush1.bf16.msra.mxu1 %v2470_v55  ;;  %v2515_v54 = vcombine.high %v1049_v49, %v1051_v50  ;;  %v1053_v55 = vld [vmem:[%s3925_s2 + $0x310] sm:$0x33]  ;;  %v1050_v49 = vld [vmem:[%s3925_s2 + $0x2d8] sm:$0xff] }
  0x3b   :  { %2523 = vmatprep.mubr.msk.bf16.mxu1 %vm461_vm0, %v3210_v56  ;;  %1441 = vmatprep.subr.bf16.mxu1 %v2475_v57  ;;  %v2772_v57 = vld [vmem:[%s3927_s4 + $0x160] ss:$16 sps:$4 sm:$0xff]   ;;  %v2519_v60 = vcombine.high %v1053_v55, %v1053_v55  ;;  %v1052_v50 = vld [vmem:[%s3925_s2 + $0x2f8] sm:$0xff] }
  0x3c   :  { %909 = vmatprep.subr.bf16.mxu0 %v2744_v59  ;;  %v2777_v59 = vld [vmem:[%s3927_s4 + $0x184] ss:$16 sps:$4 sm:$0xff]  }
  0x3e   :  { %910 = vmatpush1.bf16.msra.mxu0 %v2742_v61  ;;  %1442 = vmatpush1.bf16.msra.mxu1 %v2474_v63  ;;  %v2518_v61 = vcombine.low %v1053_v55, %v1053_v55  ;;  %v1008_v63 = vld [vmem:[%s3925_s2 + $0x38] sm:$0xff] }
  0x3f   :  { %911 = vmatprep.subr.bf16.mxu0 %v2747_v62  ;;  %1443 = vmatprep.subr.bf16.mxu1 %v2479_v2  ;;  %v1006_v62 = vld [vmem:[%s3925_s2 + $0x18] sm:$0xff]  ;;  %v1001_v2 = vld [vmem:[%s3928_s1 + $0x10] sm:$0xff] }
  0x40   :  { %v1054_v55 = vld [vmem:[%s3925_s2 + $0x318] sm:$0x33] }
  0x42   :  { %912 = vmatpush1.bf16.msra.mxu0 %v2745_v3  ;;  %1444 = vmatpush1.bf16.msra.mxu1 %v2478_v5  ;;  %v2780_v3 = vld [vmem:[%s3927_s4 + $0x1a4] ss:$16 sps:$4 sm:$0xff]   ;;  %v2473_v5 = vcombine.high %v1006_v62, %v1008_v63 }
  0x43   :  { %913 = vmatprep.subr.bf16.mxu0 %v2750_v4  ;;  %1445 = vmatprep.subr.bf16.mxu1 %v2483_v8  ;;  %v1428_v4 = vsel %vm465_vm1, %v2518_v61, 0  ;;  %v3372_v8 = vpack.c.bf16 %v1001_v2, %v999_v1  ;;  %v2787_v1 = vld [vmem:[%s3927_s4 + $0x28] ss:$16 sps:$4 sm:$0xff]   ;;  %v2795_v2 = vld [vmem:[%s3927_s4 + $0x4c] ss:$16 sps:$4 sm:$0xff]  }
  0x46   :  { %914 = vmatpush1.bf16.msra.mxu0 %v2748_v9  ;;  %1446 = vmatpush1.bf16.msra.mxu1 %v2482_v11  ;;  %v2778_v9 = vld [vmem:[%s3927_s4 + $0x1a0] ss:$16 sps:$4 sm:$0xff]   ;;  %v2477_v11 = vcombine.high %v1010_v6, %v1012_v7 }
  0x47   :  { %915 = vmatprep.subr.bf16.mxu0 %v2753_v10  ;;  %1447 = vmatprep.subr.bf16.mxu1 %v2487_v14  ;;  %v2472_v10 = vcombine.low %v1006_v62, %v1008_v63  ;;  %v2476_v14 = vcombine.low %v1010_v6, %v1012_v7  ;;  %v2783_v62 = vld [vmem:[%s3927_s4 + $0xc] ss:$16 sps:$4 sm:$0xff]   ;;  %v2781_v63 = vld [vmem:[%s3927_s4 + $0x8] ss:$16 sps:$4 sm:$0xff]  }
  0x48   :  { %v2807_v6 = vld [vmem:[%s3927_s4 + $0x8c] ss:$16 sps:$4 sm:$0xff]   ;;  %v2805_v7 = vld [vmem:[%s3927_s4 + $0x88] ss:$16 sps:$4 sm:$0xff]  }
  0x4a   :  { %916 = vmatpush1.bf16.msra.mxu0 %v2751_v15  ;;  %1448 = vmatpush1.bf16.msra.mxu1 %v2486_v17  ;;  %v2481_v15 = vcombine.high %v1014_v12, %v1016_v13  ;;  %v1020_v17 = vld [vmem:[%s3925_s2 + $0xf8] sm:$0xff] }
  0x4b   :  { %917 = vmatprep.subr.bf16.mxu0 %v2756_v16  ;;  %1449 = vmatprep.subr.bf16.mxu1 %v2491_v20  ;;  %v1018_v16 = vld [vmem:[%s3925_s2 + $0xd8] sm:$0xff] }
  0x4c   :  { %v2485_v19 = vcombine.high %v1018_v16, %v1020_v17  ;;  %v1022_v20 = vld [vmem:[%s3925_s2 + $0x118] sm:$0xff] }
  0x4d   :  { %v2825_v12 = vld [vmem:[%s3927_s4 + $0xec] ss:$16 sps:$4 sm:$0xff]   ;;  %v2823_v13 = vld [vmem:[%s3927_s4 + $0xe8] ss:$16 sps:$4 sm:$0xff]  }
  0x4e   :  { %918 = vmatpush1.bf16.msra.mxu0 %v2754_v21  ;;  %1450 = vmatpush1.bf16.msra.mxu1 %v2490_v23  ;;  %v2484_v21 = vcombine.low %v1018_v16, %v1020_v17  ;;  %v1026_v23 = vld [vmem:[%s3925_s2 + $0x158] sm:$0xff] }
  0x4f   :  { %919 = vmatprep.subr.bf16.mxu0 %v2759_v22  ;;  %1451 = vmatprep.subr.bf16.mxu1 %v2495_v26  ;;  %v2493_v26 = vcombine.high %v1026_v23, %v1028_v24  ;;  %v2837_v16 = vld [vmem:[%s3927_s4 + $0x12c] ss:$16 sps:$4 sm:$0xff]   ;;  %v2835_v17 = vld [vmem:[%s3927_s4 + $0x128] ss:$16 sps:$4 sm:$0xff]  }
  0x52   :  { %920 = vmatpush1.bf16.msra.mxu0 %v2757_v27  ;;  %1452 = vmatpush1.bf16.msra.mxu1 %v2494_v29  ;;  %v1030_v27 = vld [vmem:[%s3925_s2 + $0x198] sm:$0xff]  ;;  %v2492_v29 = vcombine.low %v1026_v23, %v1028_v24 }
  0x53   :  { %921 = vmatprep.subr.bf16.mxu0 %v2762_v28  ;;  %1453 = vmatprep.subr.bf16.mxu1 %v2499_v32  ;;  %v1032_v28 = vld [vmem:[%s3925_s2 + $0x1b8] sm:$0xff] }
  0x54   :  { %v2497_v30 = vcombine.high %v1030_v27, %v1032_v28  ;;  %v1036_v32 = vld [vmem:[%s3925_s2 + $0x1f8] sm:$0xff] }
  0x55   :  { %v2500_v37 = vcombine.low %v1034_v31, %v1036_v32  ;;  %v2861_v23 = vld [vmem:[%s3927_s4 + $0x1ac] ss:$16 sps:$4 sm:$0xff]   ;;  %v2859_v24 = vld [vmem:[%s3927_s4 + $0x1a8] ss:$16 sps:$4 sm:$0xff]  }
  0x56   :  { %922 = vmatpush1.bf16.msra.mxu0 %v2760_v33  ;;  %1454 = vmatpush1.bf16.msra.mxu1 %v2498_v35  ;;  %v2496_v33 = vcombine.low %v1030_v27, %v1032_v28  ;;  %v1038_v35 = vld [vmem:[%s3925_s2 + $0x218] sm:$0xff] }
  0x57   :  { %923 = vmatprep.subr.bf16.mxu0 %v2765_v34  ;;  %1455 = vmatprep.subr.bf16.mxu1 %v2503_v38  ;;  %v2501_v34 = vcombine.high %v1034_v31, %v1036_v32  ;;  %v2505_v38 = vcombine.high %v1038_v35, %v1040_v36  ;;  %v2873_v27 = vld [vmem:[%s3927_s4 + $0x1ec] ss:$16 sps:$4 sm:$0xff]   ;;  %v2871_v28 = vld [vmem:[%s3927_s4 + $0x1e8] ss:$16 sps:$4 sm:$0xff]  }
  0x5a   :  { %924 = vmatpush1.bf16.msra.mxu0 %v2763_v39  ;;  %1456 = vmatpush1.bf16.msra.mxu1 %v2502_v41  ;;  %v1042_v39 = vld [vmem:[%s3925_s2 + $0x258] sm:$0xff]  ;;  %v2504_v41 = vcombine.low %v1038_v35, %v1040_v36  ;;  %v92_v35 = vld [vmem:[%s3929_s3] sm:$0xf] }
  0x5b   :  { %925 = vmatprep.subr.bf16.mxu0 %v2768_v40  ;;  %1457 = vmatprep.subr.bf16.mxu1 %v2507_v44  ;;  %v1044_v40 = vld [vmem:[%s3925_s2 + $0x278] sm:$0xff] }
  0x5c   :  { %v2509_v42 = vcombine.high %v1042_v39, %v1044_v40  ;;  %v1048_v44 = vld [vmem:[%s3925_s2 + $0x2b8] sm:$0xff] }
  0x5e   :  { %926 = vmatpush1.bf16.msra.mxu0 %v2766_v45  ;;  %1458 = vmatpush1.bf16.msra.mxu1 %v2506_v46  ;;  %v2786_v45 = vld [vmem:[%s3927_s4 + $0x1c4] ss:$16 sps:$4 sm:$0xff]   ;;  %v2784_v46 = vld [vmem:[%s3927_s4 + $0x1c0] ss:$16 sps:$4 sm:$0xff]  }
  0x5f   :  { %927 = vmatprep.subr.bf16.mxu0 %v2771_v47  ;;  %1459 = vmatprep.subr.bf16.mxu1 %v2511_v48  ;;  %v2508_v47 = vcombine.low %v1042_v39, %v1044_v40  ;;  %v2513_v48 = vcombine.high %v1046_v43, %v1048_v44 }
  0x62   :  { %928 = vmatpush1.bf16.msra.mxu0 %v2769_v51  ;;  %1460 = vmatpush1.bf16.msra.mxu1 %v2510_v52  ;;  %v2792_v51 = vld [vmem:[%s3927_s4 + $0x1e4] ss:$16 sps:$4 sm:$0xff]   ;;  %v2790_v52 = vld [vmem:[%s3927_s4 + $0x1e0] ss:$16 sps:$4 sm:$0xff]  }
  0x63   :  { %929 = vmatprep.subr.bf16.mxu0 %v2774_v53  ;;  %1461 = vmatprep.subr.bf16.mxu1 %v2515_v54  ;;  %v2512_v53 = vcombine.low %v1046_v43, %v1048_v44  ;;  %v2517_v54 = vcombine.high %v1050_v49, %v1052_v50 }
  0x66   :  { %930 = vmatpush1.bf16.msra.mxu0 %v2772_v57  ;;  %1462 = vmatpush1.bf16.msra.mxu1 %v2514_v58  ;;  %v2798_v57 = vld [vmem:[%s3927_s4 + $0x204] ss:$16 sps:$4 sm:$0xff]   ;;  %v2516_v58 = vcombine.low %v1050_v49, %v1052_v50 }
  0x67   :  { %931 = vmatprep.subr.bf16.mxu0 %v2777_v59  ;;  %2522 = vmatprep.subr.msk.bf16.mxu1 %vm465_vm1, %v2519_v60  ;;  %v2521_v59 = vcombine.high %v1054_v55, %v1054_v55  ;;  %v2520_v60 = vcombine.low %v1054_v55, %v1054_v55 }
  0x69   :  { %v1434_v61 = vsel %vm465_vm1, %v2520_v60, 0 }
  0x6a   :  { %932 = vmatpush1.bf16.msra.mxu0 %v2775_v0  ;;  %1464 = vmatpush1.bf16.msra.mxu1 %v1428_v4  ;;  %v2789_v0 = vld [vmem:[%s3927_s4 + $0x2c] ss:$16 sps:$4 sm:$0xff]  }
  0x6b   :  { %933 = vmatprep.subr.bf16.mxu0 %v2780_v3  ;;  %1482 = vmatprep.subr.bf16.mxu1 %v2473_v5  ;;  %v2793_v3 = vld [vmem:[%s3927_s4 + $0x48] ss:$16 sps:$4 sm:$0xff]   ;;  %v2801_v4 = vld [vmem:[%s3927_s4 + $0x6c] ss:$16 sps:$4 sm:$0xff]  }
  0x6c   :  { %v2799_v5 = vld [vmem:[%s3927_s4 + $0x68] ss:$16 sps:$4 sm:$0xff]  }
  0x6d   :  { %1472 = vmatmul.mubr.bf16.vlgmr.msra.gmra.mrb[4].mxu1 %v3372_v8 }
  0x6e   :  { %934 = vmatpush1.bf16.msra.mxu0 %v2778_v9  ;;  %1483 = vmatpush1.bf16.msra.mxu1 %v2472_v10  ;;  %v2811_v9 = vld [vmem:[%s3927_s4 + $0xa8] ss:$16 sps:$4 sm:$0xff]   ;;  %v2819_v10 = vld [vmem:[%s3927_s4 + $0xcc] ss:$16 sps:$4 sm:$0xff]  }
  0x6f   :  { %2525 = vmatprep.mubr.msk.bf16.mxu1 %vm461_vm0, %v3210_v56  ;;  %1484 = vmatprep.subr.bf16.mxu1 %v2477_v11  ;;  %v1024_v56 = vld [vmem:[%s3925_s2 + $0x138] sm:$0xff] }
  0x70   :  { %v2489_v22 = vcombine.high %v1022_v20, %v1024_v56  ;;  %v2488_v25 = vcombine.low %v1022_v20, %v1024_v56  ;;  %935 = vmatprep.subr.bf16.mxu0 %v2786_v45  ;;  %v2817_v11 = vld [vmem:[%s3927_s4 + $0xc8] ss:$16 sps:$4 sm:$0xff]   ;;  %v2849_v20 = vld [vmem:[%s3927_s4 + $0x16c] ss:$16 sps:$4 sm:$0xff]  }
  0x71   :  { %v2847_v56 = vld [vmem:[%s3927_s4 + $0x168] ss:$16 sps:$4 sm:$0xff]  }
  0x72   :  { %1485 = vmatpush1.bf16.msra.mxu1 %v2476_v14  ;;  %936 = vmatpush1.bf16.msra.mxu0 %v2784_v46  ;;  %v2831_v14 = vld [vmem:[%s3927_s4 + $0x10c] ss:$16 sps:$4 sm:$0xff]  }
  0x73   :  { %1486 = vmatprep.subr.bf16.mxu1 %v2481_v15  ;;  %937 = vmatprep.subr.bf16.mxu0 %v2792_v51  ;;  %v2829_v15 = vld [vmem:[%s3927_s4 + $0x108] ss:$16 sps:$4 sm:$0xff]  }
  0x76   :  { %1487 = vmatpush1.bf16.msra.mxu1 %v2480_v18  ;;  %938 = vmatpush1.bf16.msra.mxu0 %v2790_v52  ;;  %v2843_v18 = vld [vmem:[%s3927_s4 + $0x14c] ss:$16 sps:$4 sm:$0xff]  }
  0x77   :  { %1488 = vmatprep.subr.bf16.mxu1 %v2485_v19  ;;  %950 = vmatprep.subr.bf16.mxu0 %v2798_v57  ;;  %v2841_v19 = vld [vmem:[%s3927_s4 + $0x148] ss:$16 sps:$4 sm:$0xff]  }
  0x7a   :  { %1489 = vmatpush1.bf16.msra.mxu1 %v2484_v21  ;;  %v2855_v21 = vld [vmem:[%s3927_s4 + $0x18c] ss:$16 sps:$4 sm:$0xff]  }
  0x7b   :  { %1490 = vmatprep.subr.bf16.mxu1 %v2489_v22  ;;  %v2853_v22 = vld [vmem:[%s3927_s4 + $0x188] ss:$16 sps:$4 sm:$0xff]  }
  0x7e   :  { %1491 = vmatpush1.bf16.msra.mxu1 %v2488_v25  ;;  %v2867_v25 = vld [vmem:[%s3927_s4 + $0x1cc] ss:$16 sps:$4 sm:$0xff]  }
  0x7f   :  { %1492 = vmatprep.subr.bf16.mxu1 %v2493_v26  ;;  %v2865_v26 = vld [vmem:[%s3927_s4 + $0x1c8] ss:$16 sps:$4 sm:$0xff]  }
  0x82   :  { %1493 = vmatpush1.bf16.msra.mxu1 %v2492_v29  ;;  %v2879_v29 = vld [vmem:[%s3927_s4 + $0x20c] ss:$16 sps:$4 sm:$0xff]  }
  0x83   :  { %1494 = vmatprep.subr.bf16.mxu1 %v2497_v30  ;;  %v191_v30 = vlaneseq }
  0x85   :  { %v3560_v31 = vshrl.u32 %v191_v30, 7  ;;  %v2862_v30 = vld [vmem:[%s3927_s4 + $0x360] ss:$16 sps:$4 sm:$0xff]  }
  0x86   :  { %1495 = vmatpush1.bf16.msra.mxu1 %v2496_v33 }
  0x87   :  { %1496 = vmatprep.subr.bf16.mxu1 %v2501_v34  ;;  %v3563_v32 = vsub.s32 0, %v3560_v31  ;;  %v201_v33 = vsub.s32 2, %v3560_v31  ;;  %v3567_v34 = vsub.s32 1, %v3560_v31  ;;  %v205_v36 = vsub.s32 3, %v3560_v31 }
  0x89   :  { %v198_v39 = vrot.slane %v92_v35, %v3567_v34  ;;  %v206_v40 = vrot.slane %v92_v35, %v205_v36 }
  0x8a   :  { %1497 = vmatpush1.bf16.msra.mxu1 %v2500_v37  ;;  %v194_v37 = vrot.slane %v92_v35, %v3563_v32 }
  0x8b   :  { %1498 = vmatprep.subr.bf16.mxu1 %v2505_v38  ;;  %v202_v38 = vrot.slane %v92_v35, %v201_v33 }
  0x8e   :  { %1499 = vmatpush1.bf16.msra.mxu1 %v2504_v41 }
  0x8f   :  { %1500 = vmatprep.subr.bf16.mxu1 %v2509_v42 }
  0x92   :  { %1501 = vmatpush1.bf16.msra.mxu1 %v2508_v47 }
  0x93   :  { %1502 = vmatprep.subr.bf16.mxu1 %v2513_v48 }
  0x96   :  { %1503 = vmatpush1.bf16.msra.mxu1 %v2512_v53 }
  0x97   :  { %1504 = vmatprep.subr.bf16.mxu1 %v2517_v54 }
  0x9a   :  { %1505 = vmatpush1.bf16.msra.mxu1 %v2516_v58 }
  0x9b   :  { %2524 = vmatprep.subr.msk.bf16.mxu1 %vm465_vm1, %v2521_v59 }
  0x9e   :  { %1507 = vmatpush1.bf16.msra.mxu1 %v1434_v61 }
  0x9f   :  { %1868 = vmatprep.subr.bf16.mxu1 %v2783_v62 }
  0xa1   :  { %1515 = vmatmul.mubr.bf16.vlgmr.msra.gmra.mrb[8].mxu1 %v3372_v8  ;;  %v2813_v8 = vld [vmem:[%s3927_s4 + $0xac] ss:$16 sps:$4 sm:$0xff]  }
  0xa2   :  { %1869 = vmatpush1.bf16.msra.mxu1 %v2781_v63 }
  0xa3   :  { %1870 = vmatprep.subr.bf16.mxu1 %v2789_v0 }
  0xa6   :  { %1871 = vmatpush1.bf16.msra.mxu1 %v2787_v1 }
  0xa7   :  { %1872 = vmatprep.subr.bf16.mxu1 %v2795_v2 }
  0xaa   :  { %1873 = vmatpush1.bf16.msra.mxu1 %v2793_v3 }
  0xab   :  { %1874 = vmatprep.subr.bf16.mxu1 %v2801_v4 }
  0xae   :  { %1875 = vmatpush1.bf16.msra.mxu1 %v2799_v5  ;;  %v2796_v5 = vld [vmem:[%s3927_s4 + $0x200] ss:$16 sps:$4 sm:$0xff]  }
  0xaf   :  { %1876 = vmatprep.subr.bf16.mxu1 %v2807_v6 }
  0xb2   :  { %1877 = vmatpush1.bf16.msra.mxu1 %v2805_v7  ;;  %v2804_v7 = vld [vmem:[%s3927_s4 + $0x224] ss:$16 sps:$4 sm:$0xff]  }
  0xb3   :  { %1878 = vmatprep.subr.bf16.mxu1 %v2813_v8  ;;  %v2802_v8 = vld [vmem:[%s3927_s4 + $0x220] ss:$16 sps:$4 sm:$0xff]  }
  0xb6   :  { %1879 = vmatpush1.bf16.msra.mxu1 %v2811_v9  ;;  %v2810_v9 = vld [vmem:[%s3927_s4 + $0x244] ss:$16 sps:$4 sm:$0xff]  }
  0xb7   :  { %1880 = vmatprep.subr.bf16.mxu1 %v2819_v10  ;;  %v2808_v10 = vld [vmem:[%s3927_s4 + $0x240] ss:$16 sps:$4 sm:$0xff]  }
  0xba   :  { %1881 = vmatpush1.bf16.msra.mxu1 %v2817_v11  ;;  %v2816_v11 = vld [vmem:[%s3927_s4 + $0x264] ss:$16 sps:$4 sm:$0xff]  }
  0xbb   :  { %1882 = vmatprep.subr.bf16.mxu1 %v2825_v12  ;;  %v2814_v12 = vld [vmem:[%s3927_s4 + $0x260] ss:$16 sps:$4 sm:$0xff]  }
  0xbe   :  { %1883 = vmatpush1.bf16.msra.mxu1 %v2823_v13  ;;  %v2822_v13 = vld [vmem:[%s3927_s4 + $0x284] ss:$16 sps:$4 sm:$0xff]  }
  0xbf   :  { %1884 = vmatprep.subr.bf16.mxu1 %v2831_v14  ;;  %v2820_v14 = vld [vmem:[%s3927_s4 + $0x280] ss:$16 sps:$4 sm:$0xff]  }
  0xc2   :  { %1885 = vmatpush1.bf16.msra.mxu1 %v2829_v15  ;;  %v2828_v15 = vld [vmem:[%s3927_s4 + $0x2a4] ss:$16 sps:$4 sm:$0xff]  }
  0xc3   :  { %1886 = vmatprep.subr.bf16.mxu1 %v2837_v16  ;;  %v2826_v16 = vld [vmem:[%s3927_s4 + $0x2a0] ss:$16 sps:$4 sm:$0xff]  }
  0xc6   :  { %1887 = vmatpush1.bf16.msra.mxu1 %v2835_v17  ;;  %v2834_v17 = vld [vmem:[%s3927_s4 + $0x2c4] ss:$16 sps:$4 sm:$0xff]  }
  0xc7   :  { %1888 = vmatprep.subr.bf16.mxu1 %v2843_v18  ;;  %v2832_v18 = vld [vmem:[%s3927_s4 + $0x2c0] ss:$16 sps:$4 sm:$0xff]  }
  0xca   :  { %1889 = vmatpush1.bf16.msra.mxu1 %v2841_v19  ;;  %v2840_v19 = vld [vmem:[%s3927_s4 + $0x2e4] ss:$16 sps:$4 sm:$0xff]  }
  0xcb   :  { %1890 = vmatprep.subr.bf16.mxu1 %v2849_v20  ;;  %v2838_v20 = vld [vmem:[%s3927_s4 + $0x2e0] ss:$16 sps:$4 sm:$0xff]  }
  0xce   :  { %1891 = vmatpush1.bf16.msra.mxu1 %v2847_v56  ;;  %v2846_v56 = vld [vmem:[%s3927_s4 + $0x304] ss:$16 sps:$4 sm:$0xff]  }
  0xcf   :  { %1892 = vmatprep.subr.bf16.mxu1 %v2855_v21  ;;  %v2844_v21 = vld [vmem:[%s3927_s4 + $0x300] ss:$16 sps:$4 sm:$0xff]  }
  0xd2   :  { %1893 = vmatpush1.bf16.msra.mxu1 %v2853_v22  ;;  %v2852_v22 = vld [vmem:[%s3927_s4 + $0x324] ss:$16 sps:$4 sm:$0xff]  }
  0xd3   :  { %1894 = vmatprep.subr.bf16.mxu1 %v2861_v23  ;;  %v2850_v23 = vld [vmem:[%s3927_s4 + $0x320] ss:$16 sps:$4 sm:$0xff]  }
  0xd6   :  { %1895 = vmatpush1.bf16.msra.mxu1 %v2859_v24  ;;  %v2858_v24 = vld [vmem:[%s3927_s4 + $0x344] ss:$16 sps:$4 sm:$0xff]  }
  0xd7   :  { %1896 = vmatprep.subr.bf16.mxu1 %v2867_v25  ;;  %v3644_v25 = vld [vmem:[%s3929_s3 + $0x4] sm:$0xf] }
  0xda   :  { %1897 = vmatpush1.bf16.msra.mxu1 %v2865_v26  ;;  %v2856_v26 = vld [vmem:[%s3927_s4 + $0x340] ss:$16 sps:$4 sm:$0xff]  }
  0xdb   :  { %1898 = vmatprep.subr.bf16.mxu1 %v2873_v27  ;;  %v2864_v27 = vld [vmem:[%s3927_s4 + $0x364] ss:$16 sps:$4 sm:$0xff]  }
  0xde   :  { %1899 = vmatpush1.bf16.msra.mxu1 %v2871_v28  ;;  %v1157_v28 = vrot.slane %v3644_v25, %v3563_v32 }
  0xdf   :  { %1911 = vmatprep.subr.bf16.mxu1 %v2879_v29  ;;  %v1161_v29 = vrot.slane %v3644_v25, %v3567_v34 }
 0x10c   :  { %v512_v41 = vpop.f32.mrb[0].mxu0  ;;  %v555_v43 = vpop.f32.mrb[0].mxu1 }
 0x10d   :  { %v513_v42 = vadd.f32 %v512_v41, %v194_v37  ;;  %v514_v44 = vpop.f32.mrb[1].mxu0  ;;  %v556_v45 = vadd.f32 %v555_v43, %v202_v38  ;;  %v557_v47 = vpop.f32.mrb[1].mxu1 }
 0x10e   :  { %v515_v46 = vadd.f32 %v514_v44, %v198_v39  ;;  %v516_v48 = vpop.f32.mrb[2].mxu0  ;;  %v558_v50 = vadd.f32 %v557_v47, %v206_v40  ;;  %v559_v52 = vpop.f32.mrb[2].mxu1  ;;  %v2868_v44 = vld [vmem:[%s3927_s4 + $0x380] ss:$16 sps:$4 sm:$0xff]  }
 0x10f   :  { %v564_v49 = vmax.f32 %v513_v42, 0.0  ;;  %v517_v51 = vadd.f32 %v516_v48, %v194_v37  ;;  %v518_v53 = vpop.f32.mrb[3].mxu0  ;;  %v566_v54 = vmax.f32 %v556_v45, 0.0  ;;  %v560_v57 = vadd.f32 %v559_v52, %v202_v38  ;;  %v561_v59 = vpop.f32.mrb[3].mxu1  ;;  %v2870_v37 = vld [vmem:[%s3927_s4 + $0x384] ss:$16 sps:$4 sm:$0xff]  }
 0x110   :  { %v565_v55 = vmax.f32 %v515_v46, 0.0  ;;  %v519_v58 = vadd.f32 %v518_v53, %v198_v39  ;;  %v562_v61 = vadd.f32 %v561_v59, %v206_v40  ;;  %v567_v0 = vmax.f32 %v558_v50, 0.0  ;;  %v2876_v46 = vld [vmem:[%s3927_s4 + $0x3a4] ss:$16 sps:$4 sm:$0xff]   ;;  %v2874_v52 = vld [vmem:[%s3927_s4 + $0x3a0] ss:$16 sps:$4 sm:$0xff]  }
 0x111   :  { %v568_v60 = vmax.f32 %v517_v51, 0.0  ;;  %v570_v62 = vmax.f32 %v560_v57, 0.0  ;;  %v2885_v57 = vld [vmem:[%s3927_s4 + $0x22c] ss:$16 sps:$4 sm:$0xff]   ;;  %v2883_v59 = vld [vmem:[%s3927_s4 + $0x228] ss:$16 sps:$4 sm:$0xff]  }
 0x112   :  { %v569_v63 = vmax.f32 %v519_v58, 0.0  ;;  %v571_v2 = vmax.f32 %v562_v61, 0.0  ;;  %v2880_v58 = vld [vmem:[%s3927_s4 + $0x3c0] ss:$16 sps:$4 sm:$0xff]   ;;  %v2891_v61 = vld [vmem:[%s3927_s4 + $0x24c] ss:$16 sps:$4 sm:$0xff]  }
 0x113   :  { %v572_v1 = vpack.c.bf16 %v568_v60, %v564_v49  ;;  %v3579_v3 = vpack.c.bf16 %v570_v62, %v566_v54  ;;  %v2877_v54 = vld [vmem:[%s3927_s4 + $0x208] ss:$16 sps:$4 sm:$0xff]   ;;  %v2888_v60 = vld [vmem:[%s3927_s4 + $0x3e4] ss:$16 sps:$4 sm:$0xff]   ;;  %v2886_v62 = vld [vmem:[%s3927_s4 + $0x3e0] ss:$16 sps:$4 sm:$0xff]  }
 0x114   :  { %v573_v4 = vpack.c.bf16 %v569_v63, %v565_v55  ;;  %v575_v6 = vpack.c.bf16 %v571_v2, %v567_v0  ;;  %v2882_v55 = vld [vmem:[%s3927_s4 + $0x3c4] ss:$16 sps:$4 sm:$0xff]   ;;  %v2889_v63 = vld [vmem:[%s3927_s4 + $0x248] ss:$16 sps:$4 sm:$0xff]   ;;  %v2894_v0 = vld [vmem:[%s3927_s4 + $0x26c] ss:$16 sps:$4 sm:$0xff]  }
 0x115   :  { %v2897_v2 = vld [vmem:[%s3927_s4 + $0x28c] ss:$16 sps:$4 sm:$0xff]  }
 0x116   :  { %939 = vmatprep.mubr.bf16.mxu0 %v573_v4  ;;  %v2895_v4 = vld [vmem:[%s3927_s4 + $0x288] ss:$16 sps:$4 sm:$0xff]  }
 0x117   :  { %940 = vmatmul.mubr.bf16.vlgmr.msra.gmra.mrb[4].mxu0 %v572_v1  ;;  %v2892_v1 = vld [vmem:[%s3927_s4 + $0x268] ss:$16 sps:$4 sm:$0xff]  }
 0x118   :  { %951 = vmatpush1.bf16.msra.mxu0 %v2796_v5  ;;  %982 = vmatprep.mubr.bf16.mxu0 %v575_v6  ;;  %v2900_v5 = vld [vmem:[%s3927_s4 + $0x2ac] ss:$16 sps:$4 sm:$0xff]   ;;  %v2898_v6 = vld [vmem:[%s3927_s4 + $0x2a8] ss:$16 sps:$4 sm:$0xff]  }
 0x119   :  { %952 = vmatprep.subr.bf16.mxu0 %v2804_v7  ;;  %v2901_v7 = vld [vmem:[%s3927_s4 + $0x2c8] ss:$16 sps:$4 sm:$0xff]  }
 0x11c   :  { %953 = vmatpush1.bf16.msra.mxu0 %v2802_v8  ;;  %v2906_v8 = vld [vmem:[%s3927_s4 + $0x2ec] ss:$16 sps:$4 sm:$0xff]  }
 0x11d   :  { %954 = vmatprep.subr.bf16.mxu0 %v2810_v9  ;;  %v2904_v9 = vld [vmem:[%s3927_s4 + $0x2e8] ss:$16 sps:$4 sm:$0xff]  }
 0x120   :  { %955 = vmatpush1.bf16.msra.mxu0 %v2808_v10  ;;  %v2909_v10 = vld [vmem:[%s3927_s4 + $0x30c] ss:$16 sps:$4 sm:$0xff]  }
 0x121   :  { %956 = vmatprep.subr.bf16.mxu0 %v2816_v11  ;;  %v2907_v11 = vld [vmem:[%s3927_s4 + $0x308] ss:$16 sps:$4 sm:$0xff]  }
 0x124   :  { %957 = vmatpush1.bf16.msra.mxu0 %v2814_v12  ;;  %v2912_v12 = vld [vmem:[%s3927_s4 + $0x32c] ss:$16 sps:$4 sm:$0xff]  }
 0x125   :  { %958 = vmatprep.subr.bf16.mxu0 %v2822_v13  ;;  %v2910_v13 = vld [vmem:[%s3927_s4 + $0x328] ss:$16 sps:$4 sm:$0xff]  }
 0x128   :  { %959 = vmatpush1.bf16.msra.mxu0 %v2820_v14  ;;  %v2915_v14 = vld [vmem:[%s3927_s4 + $0x34c] ss:$16 sps:$4 sm:$0xff]  }
 0x129   :  { %960 = vmatprep.subr.bf16.mxu0 %v2828_v15  ;;  %v2913_v15 = vld [vmem:[%s3927_s4 + $0x348] ss:$16 sps:$4 sm:$0xff]  }
 0x12c   :  { %961 = vmatpush1.bf16.msra.mxu0 %v2826_v16  ;;  %v2918_v16 = vld [vmem:[%s3927_s4 + $0x36c] ss:$16 sps:$4 sm:$0xff]  }
 0x12d   :  { %962 = vmatprep.subr.bf16.mxu0 %v2834_v17  ;;  %v1165_v17 = vrot.slane %v3644_v25, %v201_v33 }
 0x130   :  { %963 = vmatpush1.bf16.msra.mxu0 %v2832_v18  ;;  %v1169_v18 = vrot.slane %v3644_v25, %v205_v36  ;;  %v2919_v36 = vld [vmem:[%s3927_s4 + $0x388] ss:$16 sps:$4 sm:$0xff]  }
 0x131   :  { %964 = vmatprep.subr.bf16.mxu0 %v2840_v19  ;;  %v2916_v19 = vld [vmem:[%s3927_s4 + $0x368] ss:$16 sps:$4 sm:$0xff]  }
 0x134   :  { %965 = vmatpush1.bf16.msra.mxu0 %v2838_v20 }
 0x135   :  { %966 = vmatprep.subr.bf16.mxu0 %v2846_v56  ;;  %v2921_v56 = vld [vmem:[%s3927_s4 + $0x38c] ss:$16 sps:$4 sm:$0xff]  }
 0x138   :  { %967 = vmatpush1.bf16.msra.mxu0 %v2844_v21 }
 0x139   :  { %968 = vmatprep.subr.bf16.mxu0 %v2852_v22 }
 0x13c   :  { %969 = vmatpush1.bf16.msra.mxu0 %v2850_v23 }
 0x13d   :  { %970 = vmatprep.subr.bf16.mxu0 %v2858_v24 }
 0x140   :  { %971 = vmatpush1.bf16.msra.mxu0 %v2856_v26  ;;  %v1473_v35 = vpop.f32.mrb[4].mxu1 }
 0x141   :  { %972 = vmatprep.subr.bf16.mxu0 %v2864_v27  ;;  %v1474_v38 = vadd.f32 %v1473_v35, %v1157_v28  ;;  %v1475_v39 = vpop.f32.mrb[5].mxu1 }
 0x142   :  { %v1476_v40 = vadd.f32 %v1475_v39, %v1161_v29  ;;  %v1477_v41 = vpop.f32.mrb[6].mxu1  ;;  %v2927_v39 = vld [vmem:[%s3927_s4 + $0x3cc] ss:$16 sps:$4 sm:$0xff]  }
 0x143   :  { %v1478_v42 = vadd.f32 %v1477_v41, %v1157_v28  ;;  %v1479_v43 = vpop.f32.mrb[7].mxu1  ;;  %v1525_v47 = vmax.f32 %v1474_v38, 0.0  ;;  %v2930_v41 = vld [vmem:[%s3927_s4 + $0x3ec] ss:$16 sps:$4 sm:$0xff]  }
 0x144   :  { %973 = vmatpush1.bf16.msra.mxu0 %v2862_v30  ;;  %v1480_v45 = vadd.f32 %v1479_v43, %v1161_v29  ;;  %v1526_v49 = vmax.f32 %v1476_v40, 0.0  ;;  %v2924_v29 = vld [vmem:[%s3927_s4 + $0x3ac] ss:$16 sps:$4 sm:$0xff]   ;;  %v2925_v40 = vld [vmem:[%s3927_s4 + $0x3c8] ss:$16 sps:$4 sm:$0xff]   ;;  %v2931_v43 = vld [vmem:[%s3930_s6 + $0xc0] sm:$0xff]  }
 0x145   :  { %974 = vmatprep.subr.bf16.mxu0 %v2870_v37  ;;  %v1529_v48 = vmax.f32 %v1478_v42, 0.0  ;;  %v2922_v37 = vld [vmem:[%s3927_s4 + $0x3a8] ss:$16 sps:$4 sm:$0xff]  }
 0x146   :  { %v1530_v50 = vmax.f32 %v1480_v45, 0.0  ;;  %v2928_v42 = vld [vmem:[%s3927_s4 + $0x3e8] ss:$16 sps:$4 sm:$0xff]  }
 0x147   :  { %v1533_v51 = vpack.c.bf16 %v1529_v48, %v1525_v47  ;;  %v2933_v45 = vld [vmem:[%s3930_s6 + $0xc8] sm:$0xff]   ;;  %v2935_v47 = vld [vmem:[%s3930_s6 + $0xd0] sm:$0xff]  }
 0x148   :  { %975 = vmatpush1.bf16.msra.mxu0 %v2868_v44  ;;  %v1534_v53 = vpack.c.bf16 %v1530_v50, %v1526_v49  ;;  %v2932_v44 = vld [vmem:[%s3930_s6 + $0x80] sm:$0xff]   ;;  %v2936_v48 = vld [vmem:[%s3930_s6 + $0x90] sm:$0xff]   ;;  %v2937_v49 = vld [vmem:[%s3930_s6 + $0xd8] sm:$0xff]  }
 0x149   :  { %976 = vmatprep.subr.bf16.mxu0 %v2876_v46  ;;  %v2934_v46 = vld [vmem:[%s3930_s6 + $0x88] sm:$0xff]   ;;  %v2938_v50 = vld [vmem:[%s3930_s6 + $0x98] sm:$0xff]  }
 0x14a   :  { %1900 = vmatprep.mubr.bf16.mxu1 %v1534_v53  ;;  %v2941_v53 = vld [vmem:[%s3930_s6 + $0xe8] sm:$0xff]  }
 0x14b   :  { %1901 = vmatmul.mubr.bf16.vlgmr.msra.gmra.mrb[12].mxu1 %v1533_v51  ;;  %v2939_v51 = vld [vmem:[%s3930_s6 + $0xe0] sm:$0xff]  }
 0x14c   :  { %977 = vmatpush1.bf16.msra.mxu0 %v2874_v52  ;;  %1912 = vmatpush1.bf16.msra.mxu1 %v2877_v54  ;;  %v2940_v52 = vld [vmem:[%s3930_s6 + $0xa0] sm:$0xff]   ;;  %v2942_v54 = vld [vmem:[%s3930_s6 + $0xa8] sm:$0xff]  }
 0x14d   :  { %978 = vmatprep.subr.bf16.mxu0 %v2882_v55  ;;  %1913 = vmatprep.subr.bf16.mxu1 %v2885_v57  ;;  %v2943_v55 = vld [vmem:[%s3930_s6 + $0xf0] sm:$0xff]  }
 0x14e   :  { %v2944_v57 = vld [vmem:[%s3930_s6 + $0xb0] sm:$0xff]  }
 0x150   :  { %979 = vmatpush1.bf16.msra.mxu0 %v2880_v58  ;;  %1914 = vmatpush1.bf16.msra.mxu1 %v2883_v59  ;;  %v2945_v58 = vld [vmem:[%s3930_s6 + $0xf8] sm:$0xff]  }
 0x151   :  { %980 = vmatprep.subr.bf16.mxu0 %v2888_v60  ;;  %1915 = vmatprep.subr.bf16.mxu1 %v2891_v61  ;;  %v2946_v59 = vld [vmem:[%s3930_s6 + $0xb8] sm:$0xff]   ;;  %v2947_v60 = vld [vmem:[%s3930_s6 + $0x40] sm:$0xff]  }
 0x152   :  { %v157_v61 = vld [vmem:[%s3931_s5] sm:$0x3] }
 0x154   :  { %981 = vmatpush1.bf16.msra.mxu0 %v2886_v62  ;;  %1916 = vmatpush1.bf16.msra.mxu1 %v2889_v63  ;;  %v580_v62 = vrot.slane %v157_v61, %v3563_v32  ;;  %v584_v63 = vrot.slane %v157_v61, %v3567_v34 }
 0x155   :  { %1917 = vmatprep.subr.bf16.mxu1 %v2894_v0  ;;  %2626 = vmatprep.subr.bf16.mxu0 %v2931_v43  ;;  %v2961_v43 = vld [vmem:[%s3930_s6 + $0x78] sm:$0xff]  }
 0x157   :  { %983 = vmatmul.mubr.bf16.vlgmr.msra.gmra.mrb[4].mxu0 %v3579_v3  ;;  %v2903_v3 = vld [vmem:[%s3927_s4 + $0x2cc] ss:$16 sps:$4 sm:$0xff]  }
 0x158   :  { %1918 = vmatpush1.bf16.msra.mxu1 %v2892_v1  ;;  %2627 = vmatpush3.bf16.msra.mxu0 %v2932_v44  ;;  %v2962_v44 = vld [vmem:[%s3930_s6 + $0x38] sm:$0xff]  }
 0x159   :  { %1919 = vmatprep.subr.bf16.mxu1 %v2897_v2  ;;  %2628 = vmatprep.subr.bf16.mxu0 %v2933_v45  ;;  %v2245_v45 = vld [vmem:[%s3932_s8] sm:$0xff] }
 0x15c   :  { %1920 = vmatpush1.bf16.msra.mxu1 %v2895_v4  ;;  %2629 = vmatpush3.bf16.msra.mxu0 %v2934_v46  ;;  %v2246_v46 = vld [vmem:[%s3932_s8 + $0x8] sm:$0xff] }
 0x15d   :  { %1921 = vmatprep.subr.bf16.mxu1 %v2900_v5  ;;  %2630 = vmatprep.subr.bf16.mxu0 %v2935_v47  ;;  %v2699_v47 = vpack.c.bf16 %v2246_v46, %v2245_v45 }
 0x160   :  { %1922 = vmatpush1.bf16.msra.mxu1 %v2898_v6  ;;  %2631 = vmatpush3.bf16.msra.mxu0 %v2936_v48  ;;  %v2247_v48 = vld [vmem:[%s3932_s8 + $0x10] sm:$0xff] }
 0x161   :  { %1923 = vmatprep.subr.bf16.mxu1 %v2903_v3  ;;  %2632 = vmatprep.subr.bf16.mxu0 %v2937_v49  ;;  %v2248_v49 = vld [vmem:[%s3932_s8 + $0x18] sm:$0xff] }
 0x164   :  { %1924 = vmatpush1.bf16.msra.mxu1 %v2901_v7  ;;  %2633 = vmatpush3.bf16.msra.mxu0 %v2938_v50  ;;  %v2703_v50 = vpack.c.bf16 %v2248_v49, %v2247_v48 }
 0x165   :  { %1925 = vmatprep.subr.bf16.mxu1 %v2906_v8  ;;  %2634 = vmatprep.subr.bf16.mxu0 %v2939_v51  ;;  %v2249_v51 = vld [vmem:[%s3932_s8 + $0x20] sm:$0xff] }
 0x168   :  { %1926 = vmatpush1.bf16.msra.mxu1 %v2904_v9  ;;  %2635 = vmatpush3.bf16.msra.mxu0 %v2940_v52  ;;  %v2250_v52 = vld [vmem:[%s3932_s8 + $0x28] sm:$0xff] }
 0x169   :  { %1927 = vmatprep.subr.bf16.mxu1 %v2909_v10  ;;  %2636 = vmatprep.subr.bf16.mxu0 %v2941_v53  ;;  %v2707_v53 = vpack.c.bf16 %v2250_v52, %v2249_v51 }
 0x16c   :  { %1928 = vmatpush1.bf16.msra.mxu1 %v2907_v11  ;;  %2637 = vmatpush3.bf16.msra.mxu0 %v2942_v54  ;;  %v2251_v54 = vld [vmem:[%s3932_s8 + $0x30] sm:$0xff] }
 0x16d   :  { %1929 = vmatprep.subr.bf16.mxu1 %v2912_v12  ;;  %2638 = vmatprep.subr.bf16.mxu0 %v2943_v55  ;;  %v2252_v55 = vld [vmem:[%s3932_s8 + $0x38] sm:$0xff] }
 0x170   :  { %1930 = vmatpush1.bf16.msra.mxu1 %v2910_v13  ;;  %2639 = vmatpush3.bf16.msra.mxu0 %v2944_v57  ;;  %v2711_v57 = vpack.c.bf16 %v2252_v55, %v2251_v54 }
 0x171   :  { %1931 = vmatprep.subr.bf16.mxu1 %v2915_v14  ;;  %2640 = vmatprep.subr.bf16.mxu0 %v2945_v58  ;;  %v1120_v14 = vld [vmem:[%s3931_s5 + $0x2] sm:$0x3] }
 0x174   :  { %1932 = vmatpush1.bf16.msra.mxu1 %v2913_v15  ;;  %v1516_v20 = vpop.f32.mrb[8].mxu1  ;;  %2641 = vmatpush3.bf16.msra.mxu0 %v2946_v59  ;;  %v1541_v15 = vrot.slane %v1120_v14, %v3563_v32  ;;  %v2948_v32 = vld [vmem:[%s3930_s6] sm:$0xff]  }
 0x175   :  { %1933 = vmatprep.subr.bf16.mxu1 %v2918_v16  ;;  %v1517_v21 = vadd.f32 %v1516_v20, %v1165_v17  ;;  %v1518_v22 = vpop.f32.mrb[9].mxu1  ;;  %2648 = vmatprep.subr.bf16.mxu0 %v2947_v60  ;;  %v1545_v16 = vrot.slane %v1120_v14, %v3567_v34  ;;  %v2949_v34 = vld [vmem:[%s3930_s6 + $0x48] sm:$0xff]  }
 0x176   :  { %v1519_v23 = vadd.f32 %v1518_v22, %v1169_v18  ;;  %v1520_v24 = vpop.f32.mrb[10].mxu1 }
 0x177   :  { %v1527_v33 = vmax.f32 %v1517_v21, 0.0  ;;  %v1521_v26 = vadd.f32 %v1520_v24, %v1165_v17  ;;  %v1522_v31 = vpop.f32.mrb[11].mxu1 }
 0x178   :  { %1934 = vmatpush1.bf16.msra.mxu1 %v2916_v19  ;;  %v1528_v25 = vmax.f32 %v1519_v23, 0.0  ;;  %v1523_v27 = vadd.f32 %v1522_v31, %v1169_v18 }
 0x179   :  { %1935 = vmatprep.subr.bf16.mxu1 %v2921_v56  ;;  %v1531_v28 = vmax.f32 %v1521_v26, 0.0 }
 0x17a   :  { %v1532_v30 = vmax.f32 %v1523_v27, 0.0  ;;  %v2950_v27 = vld [vmem:[%s3930_s6 + $0x8] sm:$0xff]  }
 0x17b   :  { %v1535_v35 = vpack.c.bf16 %v1531_v28, %v1527_v33  ;;  %v2951_v28 = vld [vmem:[%s3930_s6 + $0x50] sm:$0xff]  }
 0x17c   :  { %1936 = vmatpush1.bf16.msra.mxu1 %v2919_v36  ;;  %v1536_v38 = vpack.c.bf16 %v1532_v30, %v1528_v25  ;;  %v2953_v30 = vld [vmem:[%s3930_s6 + $0x58] sm:$0xff]  }
 0x17d   :  { %1937 = vmatprep.subr.bf16.mxu1 %v2924_v29  ;;  %v2952_v29 = vld [vmem:[%s3930_s6 + $0x10] sm:$0xff]  }
 0x17e   :  { %1943 = vmatprep.mubr.bf16.mxu1 %v1536_v38  ;;  %v2956_v38 = vld [vmem:[%s3930_s6 + $0x20] sm:$0xff]  }
 0x180   :  { %1938 = vmatpush1.bf16.msra.mxu1 %v2922_v37  ;;  %v2955_v37 = vld [vmem:[%s3930_s6 + $0x60] sm:$0xff]  }
 0x181   :  { %1939 = vmatprep.subr.bf16.mxu1 %v2927_v39  ;;  %v2957_v39 = vld [vmem:[%s3930_s6 + $0x68] sm:$0xff]  }
 0x184   :  { %1940 = vmatpush1.bf16.msra.mxu1 %v2925_v40  ;;  %v2958_v40 = vld [vmem:[%s3930_s6 + $0x28] sm:$0xff]  }
 0x185   :  { %1941 = vmatprep.subr.bf16.mxu1 %v2930_v41  ;;  %v2959_v41 = vld [vmem:[%s3930_s6 + $0x70] sm:$0xff]  }
 0x188   :  { %1942 = vmatpush1.bf16.msra.mxu1 %v2928_v42  ;;  %v2960_v42 = vld [vmem:[%s3930_s6 + $0x30] sm:$0xff]  }
 0x18b   :  { %1944 = vmatmul.mubr.bf16.vlgmr.msra.gmra.mrb[12].mxu1 %v1535_v35  ;;  %v2954_v35 = vld [vmem:[%s3930_s6 + $0x18] sm:$0xff]  }
 0x22a   :  { %v984_v0 = vpop.f32.mrb[4].mxu0 }
 0x22b   :  { %v2715_v1 = vadd.f32 %v984_v0, %v580_v62  ;;  %v986_v2 = vpop.f32.mrb[5].mxu0 }
 0x22c   :  { %v2716_v4 = vadd.f32 %v986_v2, %v584_v63  ;;  %v988_v5 = vpop.f32.mrb[6].mxu0 }
 0x22d   :  { %v2717_v6 = vadd.f32 %v988_v5, %v580_v62  ;;  %v990_v3 = vpop.f32.mrb[7].mxu0  ;;  %v993_v8 = vmax.f32 %v2715_v1, 0.0  ;;  %v2622_v5 = vld [vmem:[%s3933_s7] ss:$0 sm:$0xff] }
 0x22e   :  { %v2718_v7 = vadd.f32 %v990_v3, %v584_v63  ;;  %v994_v10 = vmax.f32 %v2716_v4, 0.0 }
 0x22f   :  { %v995_v9 = vmax.f32 %v2717_v6, 0.0 }
 0x230   :  { %v996_v11 = vmax.f32 %v2718_v7, 0.0 }
 0x231   :  { %v997_v12 = vpack.c.bf16 %v995_v9, %v993_v8 }
 0x232   :  { %v998_v13 = vpack.c.bf16 %v996_v11, %v994_v10 }
 0x25e   :  { %v1945_v17 = vpop.f32.mrb[12].mxu1 }
 0x25f   :  { %v2719_v18 = vadd.f32 %v1945_v17, %v1541_v15  ;;  %v1947_v19 = vpop.f32.mrb[13].mxu1 }
 0x260   :  { %v2720_v20 = vadd.f32 %v1947_v19, %v1545_v16  ;;  %v1949_v56 = vpop.f32.mrb[14].mxu1 }
 0x261   :  { %v2721_v21 = vadd.f32 %v1949_v56, %v1541_v15  ;;  %v1951_v22 = vpop.f32.mrb[15].mxu1  ;;  %v1954_v24 = vmax.f32 %v2719_v18, 0.0 }
 0x262   :  { %v2722_v23 = vadd.f32 %v1951_v22, %v1545_v16  ;;  %v1955_v26 = vmax.f32 %v2720_v20, 0.0 }
 0x263   :  { %v1956_v33 = vmax.f32 %v2721_v21, 0.0 }
 0x264   :  { %v1957_v31 = vmax.f32 %v2722_v23, 0.0 }
 0x265   :  { %v1958_v36 = vpack.c.bf16 %v1956_v33, %v1954_v24 }
 0x266   :  { %v1959_v25 = vpack.c.bf16 %v1957_v31, %v1955_v26 }
 0x268   :  { %2088 = vmatprep.mubr.bf16.mxu0 %v1959_v25 }
 0x269   :  { %2089 = vmatmul.mubr.bf16.vlgmr.msra.gmra.mrb[8].mxu0 %v1958_v36 }
 0x26a   :  { %2649 = vmatpush3.bf16.msra.mxu0 %v2948_v32  ;;  %2225 = vmatprep.mubr.bf16.mxu0 %v998_v13  ;;  %v2623_v13 = vld [vmem:[%s3934_s9] ss:$0 sm:$0xff] }
 0x26b   :  { %2650 = vmatprep.subr.bf16.mxu0 %v2949_v34 }
 0x26e   :  { %2651 = vmatpush3.bf16.msra.mxu0 %v2950_v27 }
 0x26f   :  { %2652 = vmatprep.subr.bf16.mxu0 %v2951_v28 }
 0x272   :  { %2653 = vmatpush3.bf16.msra.mxu0 %v2952_v29 }
 0x273   :  { %2654 = vmatprep.subr.bf16.mxu0 %v2953_v30 }
 0x276   :  { %2655 = vmatpush3.bf16.msra.mxu0 %v2954_v35 }
 0x277   :  { %2656 = vmatprep.subr.bf16.mxu0 %v2955_v37 }
 0x27a   :  { %2657 = vmatpush3.bf16.msra.mxu0 %v2956_v38 }
 0x27b   :  { %2658 = vmatprep.subr.bf16.mxu0 %v2957_v39 }
 0x27e   :  { %2659 = vmatpush3.bf16.msra.mxu0 %v2958_v40 }
 0x27f   :  { %2660 = vmatprep.subr.bf16.mxu0 %v2959_v41 }
 0x282   :  { %2661 = vmatpush3.bf16.msra.mxu0 %v2960_v42 }
 0x283   :  { %2662 = vmatprep.subr.bf16.mxu0 %v2961_v43 }
 0x286   :  { %2663 = vmatpush3.bf16.msra.mxu0 %v2962_v44 }
 0x287   :  { %2700 = vmatprep.subr.bf16.mxu0 %v2699_v47 }
 0x289   :  { %2226 = vmatmul.mubr.bf16.vlgmr.msra.gmra.mrb[12].mxu0 %v997_v12 }
 0x28a   :  { %2702 = vmatpush3.bf16.msra.mxu0 %v2699_v47 }
 0x28b   :  { %2704 = vmatprep.subr.bf16.mxu0 %v2703_v50 }
 0x28e   :  { %2706 = vmatpush3.bf16.msra.mxu0 %v2703_v50 }
 0x28f   :  { %2708 = vmatprep.subr.bf16.mxu0 %v2707_v53 }
 0x292   :  { %2710 = vmatpush3.bf16.msra.mxu0 %v2707_v53 }
 0x293   :  { %2712 = vmatprep.subr.bf16.mxu0 %v2711_v57 }
 0x296   :  { %2714 = vmatpush3.bf16.msra.mxu0 %v2711_v57 }
 0x33c   :  { %v2642_v58 = vpop.f32.mrb[8].mxu0 }
 0x33d   :  { %v2643_v59 = vpop.f32.mrb[9].mxu0 }
 0x33e   :  { %v2644_v60 = vadd.f32 %v2643_v59, %v2642_v58  ;;  %v2645_v61 = vpop.f32.mrb[10].mxu0 }
 0x33f   :  { %v2646_v62 = vpop.f32.mrb[11].mxu0 }
 0x340   :  { %v2647_v63 = vadd.f32 %v2646_v62, %v2645_v61 }
 0x35c   :  { %v2664_v0 = vpop.f32.mrb[12].mxu0 }
 0x35d   :  { %v2665_v1 = vpop.f32.mrb[13].mxu0 }
 0x35e   :  { %v2666_v2 = vadd.f32 %v2665_v1, %v2664_v0  ;;  %v2667_v4 = vpop.f32.mrb[14].mxu0 }
 0x35f   :  { %v2668_v6 = vpop.f32.mrb[15].mxu0 }
 0x360   :  { %v2228_v3 = vadd.f32 %v2666_v2, %v2644_v60  ;;  %v2669_v7 = vadd.f32 %v2668_v6, %v2667_v4 }
 0x362   :  { %v2241_v8 = vadd.f32 %v2622_v5, %v2228_v3  ;;  %v2231_v9 = vadd.f32 %v2669_v7, %v2647_v63 }
 0x364   :  { %v2243_v10 = vmax.f32 %v2241_v8, 0.0  ;;  %v2242_v11 = vadd.f32 %v2622_v5, %v2231_v9 }
 0x366   :  { %v2244_v12 = vmax.f32 %v2242_v11, 0.0  ;;  %2696 = vmatprep.mubr.msk.f32.mxu0 %vm2260_vm2, %v2243_v10 }
 0x368   :  { %2697 = vmatmul.mubr.msk.f32.vlgmr.msra.gmra.mrb[16].mxu0 %vm2260_vm2, %v2244_v12 }
 0x43b   :  { %v2698_v14 = vpop.f32.mrb[16].mxu0 }
 0x43c   :  { %v2339_v15 = vadd.f32 %v2698_v14, %v2623_v13  ;;  %v2333_v16 = vpop.f32.mrb[17].mxu0 }
 0x43d   :  { %v2334_v17 = vadd.f32 %v2623_v13, %v2333_v16 }
 0x43e   :  { %v2343_v18 = vmax.f32 %v2339_v15, 0.0 }
 0x43f   :  { %v2342_v19 = vmax.f32 %v2334_v17, 0.0 }
 0x440   :  { %2345 = vst [vmem:[%s3935_s10 + $0x8] sm:$0xff] %v2343_v18 }
 0x441   :  { %2344 = vst [vmem:[%s3935_s10] sm:$0xff] %v2342_v19 }

</bundles_post_ra>
